<compile_context>
chip_gen: v7x
topology: tpu7x:2x2x1
jax: 0.10.0
libtpu: 0.0.40
codegen_flags: <defaults>
</compile_context>

<pallas_src>
import functools

import jax
import jax.numpy as jnp
from jax.experimental import pallas as pl
from jax.experimental.pallas import tpu as pltpu

BN_EPS = 1e-5
NEG_SLOPE = 0.2
TILE_P_MAX = 1024               # lanes per block; 2048 also fine on v5e/v6e (128 MiB VMEM)
VMEM_LIMIT_BYTES = 32 * 1024 * 1024

_PARAMS = pltpu.CompilerParams(dimension_semantics=("parallel",),
                               vmem_limit_bytes=VMEM_LIMIT_BYTES)


def _round_up(x, m):
    return (x + m - 1) // m * m


def _choose_tile(p_real):
    """Largest lane tile (<= TILE_P_MAX), but keep >=2 grid steps when there is
    enough work so a v7x megacore can shard the 'parallel' axis across cores."""
    p128 = _round_up(max(p_real, 1), 128)
    if p128 <= 256:
        tile = p128                                  # too little work to split
    elif p128 <= TILE_P_MAX:
        tile = _round_up(-(-p128 // 2), 128)         # split into two tiles
    else:
        tile = TILE_P_MAX
    return tile, _round_up(p128, tile)


# ----------------------------------------------------------------------------
# Pallas kernels
# ----------------------------------------------------------------------------
def matmul_stats_kernel(w_ref, x_ref, y_ref, stats_ref):
    """Pass A: Y^T tile = W @ X^T tile (f32 accumulate), plus packed per-channel
    partial statistics.

    w_ref:     (Cout, K)        conv weight flattened (cin, kh, kw)-major
    x_ref:     (K, TILE_P)      im2col patches (transposed, lane-dense layout)
    y_ref:     (Cout, TILE_P)   raw conv output (no bias: cancelled by train-mode BN)
    stats_ref: (1, Cout, 2)     [:, :, 0] = partial sum, [:, :, 1] = partial sum-of-squares
    """
    y = jnp.dot(w_ref[...], x_ref[...], preferred_element_type=jnp.float32)
    y_ref[...] = y.astype(y_ref.dtype)
    ssum = jnp.sum(y, axis=1, keepdims=True)        # (Cout, 1) f32
    ssq = jnp.sum(y * y, axis=1, keepdims=True)     # (Cout, 1) f32
    stats_ref[...] = jnp.concatenate([ssum, ssq], axis=1)[None]


def bn_lrelu_kernel(stats_ref, gamma_ref, beta_ref, y_ref, o_ref, *, inv_p):
    """Pass B: fold per-tile partials into BN scale/offset in-kernel, then apply
    the affine + LeakyReLU(0.2) to a (Cout, TILE_P) tile.  BN math stays f32.

    stats_ref: (n_pt, Cout, 2)  partial sums / sumsq from pass A (tiny, resident)
    gamma_ref: (Cout, 1)        BN weight
    beta_ref:  (Cout, 1)        BN bias
    y_ref:     (Cout, TILE_P)   raw conv output (possibly bf16)
    o_ref:     (Cout, TILE_P)   activation output
    """
    tot = jnp.sum(stats_ref[...], axis=0)                           # (Cout, 2) f32
    mean = tot[:, 0:1] * inv_p                                      # (Cout, 1)
    var = jnp.maximum(tot[:, 1:2] * inv_p - mean * mean, 0.0)       # guard cancellation
    scale = gamma_ref[...] * jax.lax.rsqrt(var + BN_EPS)
    offset = beta_ref[...] - mean * scale
    y = y_ref[...].astype(jnp.float32)
    z = y * scale + offset
    o_ref[...] = jnp.maximum(z, NEG_SLOPE * z).astype(o_ref.dtype)


def final_conv_kernel(w_ref, b_ref, x_ref, o_ref):
    """Final block: (1, K) @ (K, TILE_P) + bias -> lane-dense (1, TILE_P) f32 output."""
    y = jnp.dot(w_ref[...], x_ref[...], preferred_element_type=jnp.float32)
    o_ref[...] = y + b_ref[...]


# ----------------------------------------------------------------------------
# pallas_call wrappers (tiled over P, "parallel" semantics for megacore)
# ----------------------------------------------------------------------------
def _conv_matmul_stats(w_mat, x_col, tile, act_dtype):
    cout, k = w_mat.shape
    _, p_pad = x_col.shape
    n_pt = p_pad // tile
    return pl.pallas_call(
        matmul_stats_kernel,
        grid=(n_pt,),
        in_specs=[
            pl.BlockSpec((cout, k), lambda pt: (0, 0)),          # weight: resident
            pl.BlockSpec((k, tile), lambda pt: (0, pt)),         # im2col tile
        ],
        out_specs=(
            pl.BlockSpec((cout, tile), lambda pt: (0, pt)),      # raw conv tile
            pl.BlockSpec((1, cout, 2), lambda pt: (pt, 0, 0)),   # packed partial stats
        ),
        out_shape=(
            jax.ShapeDtypeStruct((cout, p_pad), act_dtype),
            jax.ShapeDtypeStruct((n_pt, cout, 2), jnp.float32),
        ),
        compiler_params=_PARAMS,
    )(w_mat, x_col)


def _bn_lrelu(stats, gamma_col, beta_col, y, p_real, tile):
    cout, p_pad = y.shape
    n_pt = p_pad // tile
    kern = functools.partial(bn_lrelu_kernel, inv_p=1.0 / float(p_real))
    return pl.pallas_call(
        kern,
        grid=(n_pt,),
        in_specs=[
            pl.BlockSpec((n_pt, cout, 2), lambda pt: (0, 0, 0)),  # tiny, resident
            pl.BlockSpec((cout, 1), lambda pt: (0, 0)),
            pl.BlockSpec((cout, 1), lambda pt: (0, 0)),
            pl.BlockSpec((cout, tile), lambda pt: (0, pt)),
        ],
        out_specs=pl.BlockSpec((cout, tile), lambda pt: (0, pt)),
        out_shape=jax.ShapeDtypeStruct((cout, p_pad), y.dtype),
        compiler_params=_PARAMS,
    )(stats, gamma_col, beta_col, y)


def _final_conv(w_row, b_mat, x_col, tile):
    _, k = w_row.shape
    _, p_pad = x_col.shape
    n_pt = p_pad // tile
    return pl.pallas_call(
        final_conv_kernel,
        grid=(n_pt,),
        in_specs=[
            pl.BlockSpec((1, k), lambda pt: (0, 0)),
            pl.BlockSpec((1, 1), lambda pt: (0, 0)),
            pl.BlockSpec((k, tile), lambda pt: (0, pt)),
        ],
        out_specs=pl.BlockSpec((1, tile), lambda pt: (0, pt)),
        out_shape=jax.ShapeDtypeStruct((1, p_pad), jnp.float32),
        compiler_params=_PARAMS,
    )(w_row, b_mat, x_col)


# ----------------------------------------------------------------------------
# Host-side glue (channel-first layout end-to-end, no per-layer transposes)
# ----------------------------------------------------------------------------
def _im2col_t(x, kh, kw, stride):
    """x: (C, N, H, W) -> X^T of shape (K=C*kh*kw, P=N*OH*OW), K ordered (c, kh, kw)."""
    # TODO(synk): fold the patch extraction into matmul_stats_kernel (shifted
    # sub-matmuls over (n, oh)-blocks with strided in-kernel loads) to remove the
    # ~4x HBM duplication and the extra XLA gather kernel between Pallas calls.
    c, n, h, w = x.shape
    oh = (h - kh) // stride + 1
    ow = (w - kw) // stride + 1
    cols = []
    for i in range(kh):
        for j in range(kw):
            cols.append(x[:, :, i:i + stride * oh:stride,
                          j:j + stride * ow:stride])         # (C, N, OH, OW)
    col = jnp.stack(cols, axis=1)                             # (C, kh*kw, N, OH, OW)
    col = col.reshape(c * kh * kw, n * oh * ow)               # (K, P)
    return col, oh, ow


def _prep_cols(x_t, kh, kw, stride):
    _, n, _, _ = x_t.shape
    x_col, oh, ow = _im2col_t(x_t, kh, kw, stride)
    p_real = n * oh * ow
    tile, p_pad = _choose_tile(p_real)
    x_col = jnp.pad(x_col, ((0, 0), (0, p_pad - p_real)))
    return x_col, p_real, tile, oh, ow


def disc_block(x_t, w, gamma, beta, *, stride=2):
    """Conv (bias dropped, cancelled by BN) + BatchNorm2d(train) + LeakyReLU(0.2)
    on a channel-first (Cin, N, H, W) activation."""
    cout, cin, kh, kw = w.shape
    _, n, _, _ = x_t.shape
    act_dtype = x_t.dtype
    x_col, p_real, tile, oh, ow = _prep_cols(x_t, kh, kw, stride)
    w_mat = w.reshape(cout, cin * kh * kw).astype(act_dtype)

    y, stats = _conv_matmul_stats(w_mat, x_col, tile, act_dtype)
    z = _bn_lrelu(stats, gamma.reshape(cout, 1), beta.reshape(cout, 1), y, p_real, tile)
    return z[:, :p_real].reshape(cout, n, oh, ow)


def disc_final_block(x_t, w, b, *, stride=2):
    cout, cin, kh, kw = w.shape
    _, n, _, _ = x_t.shape
    act_dtype = x_t.dtype
    x_col, p_real, tile, oh, ow = _prep_cols(x_t, kh, kw, stride)
    w_row = w.reshape(cout, cin * kh * kw).astype(act_dtype)   # (1, K)
    y = _final_conv(w_row, b.reshape(1, 1).astype(jnp.float32), x_col, tile)
    return y[:, :p_real].reshape(cout, n, oh, ow)


def discriminator_forward(image, params, *, act_dtype=jnp.bfloat16):
    """Forward pass of the Discriminator. image: (N, im_chan, H, W) -> (N, 1) f32."""
    n = image.shape[0]
    x = jnp.transpose(image, (1, 0, 2, 3)).astype(act_dtype)   # single NCHW -> CNHW
    h = disc_block(x, params["w1"], params["g1"], params["be1"])
    h = disc_block(h, params["w2"], params["g2"], params["be2"])
    h = disc_final_block(h, params["w3"], params["b3"])        # (1, N, 1, 1) f32
    return jnp.moveaxis(h, 1, 0).reshape(n, -1)                # .view(len(x), -1)


# ----------------------------------------------------------------------------
# Parameter construction (deterministic, PyTorch-style default inits)
# ----------------------------------------------------------------------------
def init_params(key, im_chan=1, hidden_dim=16, kernel_size=4):
    def conv_init(k, cout, cin):
        fan_in = cin * kernel_size * kernel_size
        bound = 1.0 / (fan_in ** 0.5)
        kw_, kb_ = jax.random.split(k)
        w = jax.random.uniform(kw_, (cout, cin, kernel_size, kernel_size),
                               jnp.float32, -bound, bound)
        b = jax.random.uniform(kb_, (cout,), jnp.float32, -bound, bound)
        return w, b

    k1, k2, k3 = jax.random.split(key, 3)
    w1, b1 = conv_init(k1, hidden_dim, im_chan)
    w2, b2 = conv_init(k2, hidden_dim * 2, hidden_dim)
    w3, b3 = conv_init(k3, 1, hidden_dim * 2)
    return {
        "w1": w1, "b1": b1,
        "g1": jnp.ones((hidden_dim,), jnp.float32),
        "be1": jnp.zeros((hidden_dim,), jnp.float32),
        "w2": w2, "b2": b2,
        "g2": jnp.ones((hidden_dim * 2,), jnp.float32),
        "be2": jnp.zeros((hidden_dim * 2,), jnp.float32),
        "w3": w3, "b3": b3,
    }


# ----------------------------------------------------------------------------
# Pure-JAX reference (for verification; keeps the redundant pre-BN conv bias)
# ----------------------------------------------------------------------------
def _ref_forward(image, params):
    def conv(x, w, b):
        y = jax.lax.conv_general_dilated(
            x, w, (2, 2), "VALID",
            dimension_numbers=("NCHW", "OIHW", "NCHW"))
        return y + b[None, :, None, None]

    def bn_lrelu(y, g, be):
        mean = jnp.mean(y, axis=(0, 2, 3), keepdims=True)
        var = jnp.mean((y - mean) ** 2, axis=(0, 2, 3), keepdims=True)
        yh = (y - mean) * jax.lax.rsqrt(var + BN_EPS)
        yb = yh * g[None, :, None, None] + be[None, :, None, None]
        return jnp.where(yb >= 0, yb, NEG_SLOPE * yb)

    h = bn_lrelu(conv(image, params["w1"], params["b1"]),
                 params["g1"], params["be1"])
    h = bn_lrelu(conv(h, params["w2"], params["b2"]),
                 params["g2"], params["be2"])
    h = conv(h, params["w3"], params["b3"])
    return h.reshape(h.shape[0], -1)


# ----------------------------------------------------------------------------
if __name__ == "__main__":
    key = jax.random.PRNGKey(0)
    k_img, k_par = jax.random.split(key)

    N, IM_CHAN, H, W = 2, 1, 28, 28            # MNIST-sized input
    HIDDEN = 16                                 # small hidden_dim (module default: 64)

    image = jax.random.normal(k_img, (N, IM_CHAN, H, W), jnp.float32)
    params = init_params(k_par, im_chan=IM_CHAN, hidden_dim=HIDDEN)
    ref = _ref_forward(image, params)

    # f32 path: tight check of layout / BN-fold correctness.
    fwd_f32 = jax.jit(functools.partial(discriminator_forward, params=params,
                                        act_dtype=jnp.float32))
    out_f32 = fwd_f32(image)
    jax.block_until_ready(out_f32)
    assert out_f32.shape == (N, 1), out_f32.shape
    assert jnp.allclose(out_f32, ref, atol=5e-4, rtol=5e-4), (out_f32, ref)

    # bf16 fast path (production config): bf16 activations, f32 stats/accumulation.
    fwd_bf16 = jax.jit(functools.partial(discriminator_forward, params=params,
                                         act_dtype=jnp.bfloat16))
    out_bf16 = fwd_bf16(image)
    jax.block_until_ready(out_bf16)
    assert out_bf16.shape == (N, 1), out_bf16.shape
    assert jnp.allclose(out_bf16, ref, atol=5e-2, rtol=5e-2), (out_bf16, ref)

    print("KERNEL_OK")
</pallas_src>

<mosaic_0001>
module attributes {stable_mosaic.version = 11 : i64} {
  func.func @bn_lrelu_kernel(%arg0: i32, %arg1: memref<2x16x2xf32, #tpu.memory_space<vmem>>, %arg2: memref<16x1xf32, #tpu.memory_space<vmem>>, %arg3: memref<16x1xf32, #tpu.memory_space<vmem>>, %arg4: memref<16x256xf32, #tpu.memory_space<vmem>>, %arg5: memref<16x256xf32, #tpu.memory_space<vmem>>) attributes {dimension_semantics = [#tpu.dimension_semantics<parallel>], iteration_bounds = array<i64: 2>, scalar_prefetch = 0 : i64, scratch_operands = 0 : i64, tpu.core_type = #tpu.core_type<tc>, window_params = [{pipeline_mode = #tpu.pipeline_mode<synchronous>, transform_indices = @transform_0, window_bounds = array<i64: 2, 16, 2>}, {pipeline_mode = #tpu.pipeline_mode<synchronous>, transform_indices = @transform_1, window_bounds = array<i64: 16, 1>}, {pipeline_mode = #tpu.pipeline_mode<synchronous>, transform_indices = @transform_2, window_bounds = array<i64: 16, 1>}, {transform_indices = @transform_3, window_bounds = array<i64: 16, 256>}, {transform_indices = @transform_4, window_bounds = array<i64: 16, 256>}]} {
    %c0 = arith.constant 0 : index
    %c0_0 = arith.constant 0 : index
    %c0_1 = arith.constant 0 : index
    %0 = vector.load %arg1[%c0, %c0_0, %c0_1] : memref<2x16x2xf32, #tpu.memory_space<vmem>>, vector<2x16x2xf32>
    %cst = arith.constant dense<0.000000e+00> : vector<16x2xf32>
    %1 = vector.multi_reduction <add>, %0, %cst [0] : vector<2x16x2xf32> to vector<16x2xf32>
    %2 = vector.extract_strided_slice %1 {offsets = [0, 0], sizes = [16, 1], strides = [1, 1]} : vector<16x2xf32> to vector<16x1xf32>
    %cst_2 = arith.constant 2.958580e-03 : f32
    %3 = vector.broadcast %cst_2 : f32 to vector<16x1xf32>
    %4 = arith.mulf %2, %3 : vector<16x1xf32>
    %5 = vector.extract_strided_slice %1 {offsets = [0, 1], sizes = [16, 1], strides = [1, 1]} : vector<16x2xf32> to vector<16x1xf32>
    %cst_3 = arith.constant 2.958580e-03 : f32
    %6 = vector.broadcast %cst_3 : f32 to vector<16x1xf32>
    %7 = arith.mulf %5, %6 : vector<16x1xf32>
    %8 = arith.mulf %4, %4 : vector<16x1xf32>
    %9 = arith.subf %7, %8 : vector<16x1xf32>
    %cst_4 = arith.constant 0.000000e+00 : f32
    %10 = vector.broadcast %cst_4 : f32 to vector<16x1xf32>
    %11 = arith.maximumf %9, %10 : vector<16x1xf32>
    %c0_5 = arith.constant 0 : index
    %c0_6 = arith.constant 0 : index
    %12 = vector.load %arg2[%c0_5, %c0_6] : memref<16x1xf32, #tpu.memory_space<vmem>>, vector<16x1xf32>
    %cst_7 = arith.constant 9.99999974E-6 : f32
    %13 = vector.broadcast %cst_7 : f32 to vector<16x1xf32>
    %14 = arith.addf %11, %13 : vector<16x1xf32>
    %15 = math.rsqrt %14 : vector<16x1xf32>
    %16 = arith.mulf %12, %15 : vector<16x1xf32>
    %c0_8 = arith.constant 0 : index
    %c0_9 = arith.constant 0 : index
    %17 = vector.load %arg3[%c0_8, %c0_9] : memref<16x1xf32, #tpu.memory_space<vmem>>, vector<16x1xf32>
    %18 = arith.mulf %4, %16 : vector<16x1xf32>
    %19 = arith.subf %17, %18 : vector<16x1xf32>
    %c0_10 = arith.constant 0 : index
    %c0_11 = arith.constant 0 : index
    %20 = vector.load %arg4[%c0_10, %c0_11] : memref<16x256xf32, #tpu.memory_space<vmem>>, vector<16x256xf32>
    %21 = vector.broadcast %16 : vector<16x1xf32> to vector<16x256xf32>
    %22 = arith.mulf %20, %21 : vector<16x256xf32>
    %23 = vector.broadcast %19 : vector<16x1xf32> to vector<16x256xf32>
    %24 = arith.addf %22, %23 : vector<16x256xf32>
    %cst_12 = arith.constant 2.000000e-01 : f32
    %25 = vector.broadcast %cst_12 : f32 to vector<16x256xf32>
    %26 = arith.mulf %25, %24 : vector<16x256xf32>
    %27 = arith.maximumf %24, %26 : vector<16x256xf32>
    %c0_13 = arith.constant 0 : index
    %c0_14 = arith.constant 0 : index
    %28 = vector.load %arg5[%c0_13, %c0_14] : memref<16x256xf32, #tpu.memory_space<vmem>>, vector<16x256xf32>
    tpu.vector_store %arg5[%c0_13, %c0_14], %27 {strides = array<i32>} : memref<16x256xf32, #tpu.memory_space<vmem>>, vector<16x256xf32>,
    return
  }
  func.func @transform_0(%arg0: i32) -> (i32, i32, i32) {
    %c0_i32 = arith.constant 0 : i32
    %c0_i32_0 = arith.constant 0 : i32
    %c0_i32_1 = arith.constant 0 : i32
    %c0_i32_2 = arith.constant 0 : i32
    return %c0_i32, %c0_i32_0, %c0_i32_1 : i32, i32, i32
  }
  func.func @transform_1(%arg0: i32) -> (i32, i32) {
    %c0_i32 = arith.constant 0 : i32
    %c0_i32_0 = arith.constant 0 : i32
    %c0_i32_1 = arith.constant 0 : i32
    return %c0_i32, %c0_i32_0 : i32, i32
  }
  func.func @transform_2(%arg0: i32) -> (i32, i32) {
    %c0_i32 = arith.constant 0 : i32
    %c0_i32_0 = arith.constant 0 : i32
    %c0_i32_1 = arith.constant 0 : i32
    return %c0_i32, %c0_i32_0 : i32, i32
  }
  func.func @transform_3(%arg0: i32) -> (i32, i32) {
    %c0_i32 = arith.constant 0 : i32
    %c0_i32_0 = arith.constant 0 : i32
    return %c0_i32, %arg0 : i32, i32
  }
  func.func @transform_4(%arg0: i32) -> (i32, i32) {
    %c0_i32 = arith.constant 0 : i32
    %c0_i32_0 = arith.constant 0 : i32
    return %c0_i32, %arg0 : i32, i32
  }
}

module attributes {stable_mosaic.version = 11 : i64} {
  func.func @matmul_stats_kernel(%arg0: i32, %arg1: memref<16x16xf32, #tpu.memory_space<vmem>>, %arg2: memref<16x256xf32, #tpu.memory_space<vmem>>, %arg3: memref<16x256xf32, #tpu.memory_space<vmem>>, %arg4: memref<1x16x2xf32, #tpu.memory_space<vmem>>) attributes {dimension_semantics = [#tpu.dimension_semantics<parallel>], iteration_bounds = array<i64: 2>, scalar_prefetch = 0 : i64, scratch_operands = 0 : i64, tpu.core_type = #tpu.core_type<tc>, window_params = [{pipeline_mode = #tpu.pipeline_mode<synchronous>, transform_indices = @transform_0, window_bounds = array<i64: 16, 16>}, {transform_indices = @transform_1, window_bounds = array<i64: 16, 256>}, {transform_indices = @transform_2, window_bounds = array<i64: 16, 256>}, {transform_indices = @transform_3, window_bounds = array<i64: 1, 16, 2>}]} {
    %c0 = arith.constant 0 : index
    %c0_0 = arith.constant 0 : index
    %0 = vector.load %arg1[%c0, %c0_0] : memref<16x16xf32, #tpu.memory_space<vmem>>, vector<16x16xf32>
    %c0_1 = arith.constant 0 : index
    %c0_2 = arith.constant 0 : index
    %1 = vector.load %arg2[%c0_1, %c0_2] : memref<16x256xf32, #tpu.memory_space<vmem>>, vector<16x256xf32>
    %cst = arith.constant dense<0.000000e+00> : vector<16x256xf32>
    %2 = tpu.matmul %0, %1, %cst {dimension_numbers = #tpu.dot_dimension_numbers<[1], [0], [0], [1], [0, 0, 1, 1], [], []>} : vector<16x16xf32>, vector<16x256xf32>, vector<16x256xf32> -> vector<16x256xf32>
    %c0_3 = arith.constant 0 : index
    %c0_4 = arith.constant 0 : index
    %3 = vector.load %arg3[%c0_3, %c0_4] : memref<16x256xf32, #tpu.memory_space<vmem>>, vector<16x256xf32>
    tpu.vector_store %arg3[%c0_3, %c0_4], %2 {strides = array<i32>} : memref<16x256xf32, #tpu.memory_space<vmem>>, vector<16x256xf32>,
    %cst_5 = arith.constant dense<0.000000e+00> : vector<16xf32>
    %4 = vector.multi_reduction <add>, %2, %cst_5 [1] : vector<16x256xf32> to vector<16xf32>
    %5 = vector.shape_cast %4 : vector<16xf32> to vector<16x1xf32>
    %6 = arith.mulf %2, %2 : vector<16x256xf32>
    %cst_6 = arith.constant dense<0.000000e+00> : vector<16xf32>
    %7 = vector.multi_reduction <add>, %6, %cst_6 [1] : vector<16x256xf32> to vector<16xf32>
    %8 = vector.shape_cast %7 : vector<16xf32> to vector<16x1xf32>
    %9 = tpu.concatenate %5, %8 in 1 : vector<16x1xf32>, vector<16x1xf32> -> vector<16x2xf32>
    %10 = vector.shape_cast %9 : vector<16x2xf32> to vector<1x16x2xf32>
    %c0_7 = arith.constant 0 : index
    %c0_8 = arith.constant 0 : index
    %c0_9 = arith.constant 0 : index
    %11 = vector.load %arg4[%c0_7, %c0_8, %c0_9] : memref<1x16x2xf32, #tpu.memory_space<vmem>>, vector<1x16x2xf32>
    tpu.vector_store %arg4[%c0_7, %c0_8, %c0_9], %10 {strides = array<i32>} : memref<1x16x2xf32, #tpu.memory_space<vmem>>, vector<1x16x2xf32>,
    return
  }
  func.func @transform_0(%arg0: i32) -> (i32, i32) {
    %c0_i32 = arith.constant 0 : i32
    %c0_i32_0 = arith.constant 0 : i32
    %c0_i32_1 = arith.constant 0 : i32
    return %c0_i32, %c0_i32_0 : i32, i32
  }
  func.func @transform_1(%arg0: i32) -> (i32, i32) {
    %c0_i32 = arith.constant 0 : i32
    %c0_i32_0 = arith.constant 0 : i32
    return %c0_i32, %arg0 : i32, i32
  }
  func.func @transform_2(%arg0: i32) -> (i32, i32) {
    %c0_i32 = arith.constant 0 : i32
    %c0_i32_0 = arith.constant 0 : i32
    return %c0_i32, %arg0 : i32, i32
  }
  func.func @transform_3(%arg0: i32) -> (i32, i32, i32) {
    %c0_i32 = arith.constant 0 : i32
    %c0_i32_0 = arith.constant 0 : i32
    %c0_i32_1 = arith.constant 0 : i32
    return %arg0, %c0_i32, %c0_i32_0 : i32, i32, i32
  }
}

module attributes {stable_mosaic.version = 11 : i64} {
  func.func @matmul_stats_kernel(%arg0: i32, %arg1: memref<32x256xf32, #tpu.memory_space<vmem>>, %arg2: memref<256x128xf32, #tpu.memory_space<vmem>>, %arg3: memref<32x128xf32, #tpu.memory_space<vmem>>, %arg4: memref<1x32x2xf32, #tpu.memory_space<vmem>>) attributes {dimension_semantics = [#tpu.dimension_semantics<parallel>], iteration_bounds = array<i64: 1>, scalar_prefetch = 0 : i64, scratch_operands = 0 : i64, tpu.core_type = #tpu.core_type<tc>, window_params = [{pipeline_mode = #tpu.pipeline_mode<synchronous>, transform_indices = @transform_0, window_bounds = array<i64: 32, 256>}, {transform_indices = @transform_1, window_bounds = array<i64: 256, 128>}, {transform_indices = @transform_2, window_bounds = array<i64: 32, 128>}, {transform_indices = @transform_3, window_bounds = array<i64: 1, 32, 2>}]} {
    %c0 = arith.constant 0 : index
    %c0_0 = arith.constant 0 : index
    %0 = vector.load %arg1[%c0, %c0_0] : memref<32x256xf32, #tpu.memory_space<vmem>>, vector<32x256xf32>
    %c0_1 = arith.constant 0 : index
    %c0_2 = arith.constant 0 : index
    %1 = vector.load %arg2[%c0_1, %c0_2] : memref<256x128xf32, #tpu.memory_space<vmem>>, vector<256x128xf32>
    %cst = arith.constant dense<0.000000e+00> : vector<32x128xf32>
    %2 = tpu.matmul %0, %1, %cst {dimension_numbers = #tpu.dot_dimension_numbers<[1], [0], [0], [1], [0, 0, 1, 1], [], []>} : vector<32x256xf32>, vector<256x128xf32>, vector<32x128xf32> -> vector<32x128xf32>
    %c0_3 = arith.constant 0 : index
    %c0_4 = arith.constant 0 : index
    %3 = vector.load %arg3[%c0_3, %c0_4] : memref<32x128xf32, #tpu.memory_space<vmem>>, vector<32x128xf32>
    tpu.vector_store %arg3[%c0_3, %c0_4], %2 {strides = array<i32>} : memref<32x128xf32, #tpu.memory_space<vmem>>, vector<32x128xf32>,
    %cst_5 = arith.constant dense<0.000000e+00> : vector<32xf32>
    %4 = vector.multi_reduction <add>, %2, %cst_5 [1] : vector<32x128xf32> to vector<32xf32>
    %5 = vector.shape_cast %4 : vector<32xf32> to vector<32x1xf32>
    %6 = arith.mulf %2, %2 : vector<32x128xf32>
    %cst_6 = arith.constant dense<0.000000e+00> : vector<32xf32>
    %7 = vector.multi_reduction <add>, %6, %cst_6 [1] : vector<32x128xf32> to vector<32xf32>
    %8 = vector.shape_cast %7 : vector<32xf32> to vector<32x1xf32>
    %9 = tpu.concatenate %5, %8 in 1 : vector<32x1xf32>, vector<32x1xf32> -> vector<32x2xf32>
    %10 = vector.shape_cast %9 : vector<32x2xf32> to vector<1x32x2xf32>
    %c0_7 = arith.constant 0 : index
    %c0_8 = arith.constant 0 : index
    %c0_9 = arith.constant 0 : index
    %11 = vector.load %arg4[%c0_7, %c0_8, %c0_9] : memref<1x32x2xf32, #tpu.memory_space<vmem>>, vector<1x32x2xf32>
    tpu.vector_store %arg4[%c0_7, %c0_8, %c0_9], %10 {strides = array<i32>} : memref<1x32x2xf32, #tpu.memory_space<vmem>>, vector<1x32x2xf32>,
    return
  }
  func.func @transform_0(%arg0: i32) -> (i32, i32) {
    %c0_i32 = arith.constant 0 : i32
    %c0_i32_0 = arith.constant 0 : i32
    %c0_i32_1 = arith.constant 0 : i32
    return %c0_i32, %c0_i32_0 : i32, i32
  }
  func.func @transform_1(%arg0: i32) -> (i32, i32) {
    %c0_i32 = arith.constant 0 : i32
    %c0_i32_0 = arith.constant 0 : i32
    return %c0_i32, %arg0 : i32, i32
  }
  func.func @transform_2(%arg0: i32) -> (i32, i32) {
    %c0_i32 = arith.constant 0 : i32
    %c0_i32_0 = arith.constant 0 : i32
    return %c0_i32, %arg0 : i32, i32
  }
  func.func @transform_3(%arg0: i32) -> (i32, i32, i32) {
    %c0_i32 = arith.constant 0 : i32
    %c0_i32_0 = arith.constant 0 : i32
    %c0_i32_1 = arith.constant 0 : i32
    return %arg0, %c0_i32, %c0_i32_0 : i32, i32, i32
  }
}

module attributes {stable_mosaic.version = 11 : i64} {
  func.func @bn_lrelu_kernel(%arg0: i32, %arg1: memref<1x32x2xf32, #tpu.memory_space<vmem>>, %arg2: memref<32x1xf32, #tpu.memory_space<vmem>>, %arg3: memref<32x1xf32, #tpu.memory_space<vmem>>, %arg4: memref<32x128xf32, #tpu.memory_space<vmem>>, %arg5: memref<32x128xf32, #tpu.memory_space<vmem>>) attributes {dimension_semantics = [#tpu.dimension_semantics<parallel>], iteration_bounds = array<i64: 1>, scalar_prefetch = 0 : i64, scratch_operands = 0 : i64, tpu.core_type = #tpu.core_type<tc>, window_params = [{pipeline_mode = #tpu.pipeline_mode<synchronous>, transform_indices = @transform_0, window_bounds = array<i64: 1, 32, 2>}, {pipeline_mode = #tpu.pipeline_mode<synchronous>, transform_indices = @transform_1, window_bounds = array<i64: 32, 1>}, {pipeline_mode = #tpu.pipeline_mode<synchronous>, transform_indices = @transform_2, window_bounds = array<i64: 32, 1>}, {transform_indices = @transform_3, window_bounds = array<i64: 32, 128>}, {transform_indices = @transform_4, window_bounds = array<i64: 32, 128>}]} {
    %c0 = arith.constant 0 : index
    %c0_0 = arith.constant 0 : index
    %c0_1 = arith.constant 0 : index
    %0 = vector.load %arg1[%c0, %c0_0, %c0_1] : memref<1x32x2xf32, #tpu.memory_space<vmem>>, vector<1x32x2xf32>
    %cst = arith.constant dense<0.000000e+00> : vector<32x2xf32>
    %1 = vector.multi_reduction <add>, %0, %cst [0] : vector<1x32x2xf32> to vector<32x2xf32>
    %2 = vector.extract_strided_slice %1 {offsets = [0, 0], sizes = [32, 1], strides = [1, 1]} : vector<32x2xf32> to vector<32x1xf32>
    %cst_2 = arith.constant 2.000000e-02 : f32
    %3 = vector.broadcast %cst_2 : f32 to vector<32x1xf32>
    %4 = arith.mulf %2, %3 : vector<32x1xf32>
    %5 = vector.extract_strided_slice %1 {offsets = [0, 1], sizes = [32, 1], strides = [1, 1]} : vector<32x2xf32> to vector<32x1xf32>
    %cst_3 = arith.constant 2.000000e-02 : f32
    %6 = vector.broadcast %cst_3 : f32 to vector<32x1xf32>
    %7 = arith.mulf %5, %6 : vector<32x1xf32>
    %8 = arith.mulf %4, %4 : vector<32x1xf32>
    %9 = arith.subf %7, %8 : vector<32x1xf32>
    %cst_4 = arith.constant 0.000000e+00 : f32
    %10 = vector.broadcast %cst_4 : f32 to vector<32x1xf32>
    %11 = arith.maximumf %9, %10 : vector<32x1xf32>
    %c0_5 = arith.constant 0 : index
    %c0_6 = arith.constant 0 : index
    %12 = vector.load %arg2[%c0_5, %c0_6] : memref<32x1xf32, #tpu.memory_space<vmem>>, vector<32x1xf32>
    %cst_7 = arith.constant 9.99999974E-6 : f32
    %13 = vector.broadcast %cst_7 : f32 to vector<32x1xf32>
    %14 = arith.addf %11, %13 : vector<32x1xf32>
    %15 = math.rsqrt %14 : vector<32x1xf32>
    %16 = arith.mulf %12, %15 : vector<32x1xf32>
    %c0_8 = arith.constant 0 : index
    %c0_9 = arith.constant 0 : index
    %17 = vector.load %arg3[%c0_8, %c0_9] : memref<32x1xf32, #tpu.memory_space<vmem>>, vector<32x1xf32>
    %18 = arith.mulf %4, %16 : vector<32x1xf32>
    %19 = arith.subf %17, %18 : vector<32x1xf32>
    %c0_10 = arith.constant 0 : index
    %c0_11 = arith.constant 0 : index
    %20 = vector.load %arg4[%c0_10, %c0_11] : memref<32x128xf32, #tpu.memory_space<vmem>>, vector<32x128xf32>
    %21 = vector.broadcast %16 : vector<32x1xf32> to vector<32x128xf32>
    %22 = arith.mulf %20, %21 : vector<32x128xf32>
    %23 = vector.broadcast %19 : vector<32x1xf32> to vector<32x128xf32>
    %24 = arith.addf %22, %23 : vector<32x128xf32>
    %cst_12 = arith.constant 2.000000e-01 : f32
    %25 = vector.broadcast %cst_12 : f32 to vector<32x128xf32>
    %26 = arith.mulf %25, %24 : vector<32x128xf32>
    %27 = arith.maximumf %24, %26 : vector<32x128xf32>
    %c0_13 = arith.constant 0 : index
    %c0_14 = arith.constant 0 : index
    %28 = vector.load %arg5[%c0_13, %c0_14] : memref<32x128xf32, #tpu.memory_space<vmem>>, vector<32x128xf32>
    tpu.vector_store %arg5[%c0_13, %c0_14], %27 {strides = array<i32>} : memref<32x128xf32, #tpu.memory_space<vmem>>, vector<32x128xf32>,
    return
  }
  func.func @transform_0(%arg0: i32) -> (i32, i32, i32) {
    %c0_i32 = arith.constant 0 : i32
    %c0_i32_0 = arith.constant 0 : i32
    %c0_i32_1 = arith.constant 0 : i32
    %c0_i32_2 = arith.constant 0 : i32
    return %c0_i32, %c0_i32_0, %c0_i32_1 : i32, i32, i32
  }
  func.func @transform_1(%arg0: i32) -> (i32, i32) {
    %c0_i32 = arith.constant 0 : i32
    %c0_i32_0 = arith.constant 0 : i32
    %c0_i32_1 = arith.constant 0 : i32
    return %c0_i32, %c0_i32_0 : i32, i32
  }
  func.func @transform_2(%arg0: i32) -> (i32, i32) {
    %c0_i32 = arith.constant 0 : i32
    %c0_i32_0 = arith.constant 0 : i32
    %c0_i32_1 = arith.constant 0 : i32
    return %c0_i32, %c0_i32_0 : i32, i32
  }
  func.func @transform_3(%arg0: i32) -> (i32, i32) {
    %c0_i32 = arith.constant 0 : i32
    %c0_i32_0 = arith.constant 0 : i32
    return %c0_i32, %arg0 : i32, i32
  }
  func.func @transform_4(%arg0: i32) -> (i32, i32) {
    %c0_i32 = arith.constant 0 : i32
    %c0_i32_0 = arith.constant 0 : i32
    return %c0_i32, %arg0 : i32, i32
  }
}

module attributes {stable_mosaic.version = 11 : i64} {
  func.func @final_conv_kernel(%arg0: i32, %arg1: memref<1x512xf32, #tpu.memory_space<vmem>>, %arg2: memref<1x1xf32, #tpu.memory_space<vmem>>, %arg3: memref<512x128xf32, #tpu.memory_space<vmem>>, %arg4: memref<1x128xf32, #tpu.memory_space<vmem>>) attributes {dimension_semantics = [#tpu.dimension_semantics<parallel>], iteration_bounds = array<i64: 1>, scalar_prefetch = 0 : i64, scratch_operands = 0 : i64, tpu.core_type = #tpu.core_type<tc>, window_params = [{pipeline_mode = #tpu.pipeline_mode<synchronous>, transform_indices = @transform_0, window_bounds = array<i64: 1, 512>}, {pipeline_mode = #tpu.pipeline_mode<synchronous>, transform_indices = @transform_1, window_bounds = array<i64: 1, 1>}, {transform_indices = @transform_2, window_bounds = array<i64: 512, 128>}, {transform_indices = @transform_3, window_bounds = array<i64: 1, 128>}]} {
    %c0 = arith.constant 0 : index
    %c0_0 = arith.constant 0 : index
    %0 = vector.load %arg1[%c0, %c0_0] : memref<1x512xf32, #tpu.memory_space<vmem>>, vector<1x512xf32>
    %c0_1 = arith.constant 0 : index
    %c0_2 = arith.constant 0 : index
    %1 = vector.load %arg3[%c0_1, %c0_2] : memref<512x128xf32, #tpu.memory_space<vmem>>, vector<512x128xf32>
    %cst = arith.constant dense<0.000000e+00> : vector<1x128xf32>
    %2 = tpu.matmul %0, %1, %cst {dimension_numbers = #tpu.dot_dimension_numbers<[1], [0], [0], [1], [0, 0, 1, 1], [], []>} : vector<1x512xf32>, vector<512x128xf32>, vector<1x128xf32> -> vector<1x128xf32>
    %c0_3 = arith.constant 0 : index
    %c0_4 = arith.constant 0 : index
    %3 = vector.load %arg2[%c0_3, %c0_4] : memref<1x1xf32, #tpu.memory_space<vmem>>, vector<1x1xf32>
    %4 = vector.broadcast %3 : vector<1x1xf32> to vector<1x128xf32>
    %5 = arith.addf %2, %4 : vector<1x128xf32>
    %c0_5 = arith.constant 0 : index
    %c0_6 = arith.constant 0 : index
    %6 = vector.load %arg4[%c0_5, %c0_6] : memref<1x128xf32, #tpu.memory_space<vmem>>, vector<1x128xf32>
    tpu.vector_store %arg4[%c0_5, %c0_6], %5 {strides = array<i32>} : memref<1x128xf32, #tpu.memory_space<vmem>>, vector<1x128xf32>,
    return
  }
  func.func @transform_0(%arg0: i32) -> (i32, i32) {
    %c0_i32 = arith.constant 0 : i32
    %c0_i32_0 = arith.constant 0 : i32
    %c0_i32_1 = arith.constant 0 : i32
    return %c0_i32, %c0_i32_0 : i32, i32
  }
  func.func @transform_1(%arg0: i32) -> (i32, i32) {
    %c0_i32 = arith.constant 0 : i32
    %c0_i32_0 = arith.constant 0 : i32
    %c0_i32_1 = arith.constant 0 : i32
    return %c0_i32, %c0_i32_0 : i32, i32
  }
  func.func @transform_2(%arg0: i32) -> (i32, i32) {
    %c0_i32 = arith.constant 0 : i32
    %c0_i32_0 = arith.constant 0 : i32
    return %c0_i32, %arg0 : i32, i32
  }
  func.func @transform_3(%arg0: i32) -> (i32, i32) {
    %c0_i32 = arith.constant 0 : i32
    %c0_i32_0 = arith.constant 0 : i32
    return %c0_i32, %arg0 : i32, i32
  }
}

</mosaic_0001>

<bundles_post_ra>
// kernel: discriminator_forward.6
= control target key start
LH: loop header
LB: loop body
LE: loop exit
PB: predicated region body
PF: predicated region fallthrough
CT: control target
= control target key end

     0   :  { %s504_s15 = smov 0   ;;  %s506_s16 = smov 0   ;;  %s588_s0 = inlined_call_operand.vmem [shape: f32[2,16,2], index: 0, kind: input, shape index: {}]   ;;  %s589_s1 = inlined_call_operand.vmem [shape: f32[16,1], index: 1, kind: input, shape index: {}]   ;;  %s590_s2 = inlined_call_operand.vmem [shape: f32[16,1], index: 2, kind: input, shape index: {}]   ;;  %s591_s3 = inlined_call_operand.vmem [shape: f32[16,512], index: 3, kind: input, shape index: {}]   ;;  %s592_s4 = inlined_call_operand.vmem [shape: f32[16,512], index: 4, kind: output, shape index: {}]  }
   0x1   :  { %s508_s17 = smov 0  }
   0x2 LB: > { %s402_s18 = sadd.s32 4294967295, %s474_s17   ;;  %s521_s19 = sadd.s32 1, %s474_s17   ;;  %s474_s17 = sphi %s508_s17, %s596_s17   ;;  %s470_s16 = sphi %s506_s16, %s595_s16   ;;  %s466_s15 = sphi %s504_s15, %s594_s15  }
   0x3   : > { %s81_s20 = ssub.s32 %s474_s17, %s521_s19  ;;  %s84_s21 = sadd.s32 1, %s470_s16 }
   0x4   : > { %p82_p0 = scmp.eq.s32.totalorder %s81_s20, 0  ;;  %p91_p1 = scmp.ne.s32.totalorder %s470_s16, %s466_s15 }
   0x5   : > { %p92_p2 = scmp.eq.s32.totalorder %s474_s17, 0  ;;  %p121_p3 = scmp.eq.s32.totalorder %s402_s18, 1 }
   0x6   : > { %s532_s22 = scalar_select %p82_p0, %s470_s16, %s84_s21  }
   0x7   : > { %p93_p4 = por %p92_p2, %p91_p1  ;;  %p534_p5 = por %p121_p3, %p91_p1 }
   0x8   : > { %p405_p6 = scmp.ge.s32.totalorder %s474_s17, 2 }
   0xa   : > { %152 = sbr.rel (%p405_p6) target bundleno = 24 (0x18), region = 28 }
  0x11   : > { %155 = sbr.rel (!%p93_p4) target bundleno = 24 (0x18), region = 32  ;;  %s157_s24 = sand.u32 (%p93_p4), 1, %s470_s16  }
  0x12   : > { %s417_s25 = sshll.u32 (%p93_p4), %s474_s17, 4  ;;  %s406_s26 = sshll.u32 (%p93_p4), %s157_s24, 5 }
  0x13   : > { %s162_s29 = scalar_lea.vmem (%p93_p4), %s591_s3, %s417_s25  ;;  %s159_s30 = scalar_lea.vmem (%p93_p4), [#allocation2], %s406_s26 }
  0x14   : > { %v175_v0 = vld [vmem:[%s162_s29] sm:$0xff] (%p93_p4)  ;;  %v177_v1 = vld [vmem:[%s162_s29 + $0x8] sm:$0xff] (%p93_p4) }
  0x15   : > { %v179_v2 = vld [vmem:[%s162_s29 + $0x20] sm:$0xff] (%p93_p4)  ;;  %176 = vst [vmem:[%s159_s30] sm:$0xff] (%p93_p4), %v175_v0  ;;  %178 = vst [vmem:[%s159_s30 + $0x8] sm:$0xff] (%p93_p4), %v177_v1  ;;  %v181_v3 = vld [vmem:[%s162_s29 + $0x28] sm:$0xff] (%p93_p4) }
  0x16   : > { %180 = vst [vmem:[%s159_s30 + $0x10] sm:$0xff] (%p93_p4), %v179_v2  ;;  %182 = vst [vmem:[%s159_s30 + $0x18] sm:$0xff] (%p93_p4), %v181_v3 }
  0x18 PF: > { %p409_p7 = scmp.ge.s32.totalorder %s474_s17, 1  ;;  %p187_p8 = scmp.lt.s32.totalorder %s474_s17, 3 }
  0x1a   : > { %p188_p9 = pnand %p409_p7, %p187_p8 }
  0x1b   : > { %v220_v4 = vld [vmem:[%s588_s0] sm:$0xff] (!%p188_p9)  ;;  %v222_v5 = vld [vmem:[%s588_s0 + $0x10] sm:$0xff] (!%p188_p9)  ;;  %vm224_vm0 = vcmask (!%p188_p9), 15360   ;;  %v221_v6 = vld [vmem:[%s588_s0 + $0x8] sm:$0xff] (!%p188_p9)  ;;  %s476_s13 = smov (!%p188_p9), 1   ;;  %v477_v24 = vmov (!%p188_p9), 0  }
  0x1c   : > { %191 = sbr.rel (%p188_p9) target bundleno = 436 (0x1b4), region = 55  ;;  %v225_v7 = vsel (!%p188_p9), %vm224_vm0, %v220_v4, 0.0  ;;  %v226_v8 = vsel (!%p188_p9), %vm224_vm0, %v222_v5, 0.0  ;;  %v223_v9 = vld [vmem:[%s588_s0 + $0x18] sm:$0xff] (!%p188_p9)  ;;  %v228_v10 = vsel (!%p188_p9), %vm224_vm0, %v221_v6, 0.0  ;;  %446 = vset.pattern.permute.xlu0 (!%p188_p9), %v477_v24  ;;  %447 = vset.pattern.permute.xlu1 (!%p188_p9), %v477_v24  ;;  %s478_s14 = smov (!%p188_p9), 127  }
  0x1d   : > { %v227_v11 = vadd.f32 (!%p188_p9), %v226_v8, %v225_v7  ;;  %v229_v12 = vsel (!%p188_p9), %vm224_vm0, %v223_v9, 0.0  ;;  %v247_v29 = vld [vmem:[%s589_s1] sm:$0xff] (!%p188_p9)  ;;  %v248_v32 = vld [vmem:[%s589_s1 + $0x8] sm:$0xff] (!%p188_p9)  ;;  %s194_s30 = sand.u32 (!%p188_p9), 1, %s466_s15  }
  0x1e   : > { %v230_v13 = vadd.f32 (!%p188_p9), %v229_v12, %v228_v10  ;;  %v263_v36 = vld [vmem:[%s590_s2] sm:$0xff] (!%p188_p9)  ;;  %v264_v37 = vld [vmem:[%s590_s2 + $0x8] sm:$0xff] (!%p188_p9)  ;;  %s410_s5 = sshll.u32 (!%p188_p9), %s194_s30, 5 }
  0x1f   : > { %v231_v14 = vmul.f32 (!%p188_p9), 0.00295858, %v227_v11  ;;  %s196_s6 = scalar_lea.vmem (!%p188_p9), [#allocation2], %s410_s5  ;;  %s217_s15 = scalar_lea.vmem (!%p188_p9), [#allocation3], %s410_s5 }
  0x20   : > { %v232_v15 = vmul.f32 (!%p188_p9), 0.00295858, %v230_v13  ;;  %v269_v41 = vld [vmem:[%s196_s6] sm:$0xff] (!%p188_p9)  ;;  %v270_v43 = vld [vmem:[%s196_s6 + $0x8] sm:$0xff] (!%p188_p9)  ;;  %v271_v45 = vld [vmem:[%s196_s6 + $0x10] sm:$0xff] (!%p188_p9) }
  0x21   : > { %v233_v16 = vmul.f32 (!%p188_p9), %v231_v14, %v231_v14  ;;  %v272_v46 = vld [vmem:[%s196_s6 + $0x18] sm:$0xff] (!%p188_p9) }
  0x22   : > { %v234_v17 = vmul.f32 (!%p188_p9), %v232_v15, %v232_v15 }
  0x23   : > { %237 = vrot.lane.b32.xlu0 %v233_v16, %s476_s13  ;;  %s418_s7 = sshll.u32 (%p534_p5), %s402_s18, 4 }
  0x24   : > { %s322_s10 = scalar_lea.vmem (%p534_p5), %s592_s4, %s418_s7 }
  0x27   : > { %239 = vrot.lane.b32.xlu0 %v234_v17, %s476_s13 }
  0x95   : > { %v238_v18 = vpop.permute.xlu0 %237 }
  0x96   : > { %v243_v19 = vsub.f32 %v231_v14, %v238_v18 }
  0x98   : > { %v245_v20 = vmax.f32 %v243_v19, 0.0 }
  0x99   : > { %v240_v21 = vpop.permute.xlu0 %239 }
  0x9a   : > { %v249_v22 = vadd.f32 1e-05, %v245_v20  ;;  %v244_v23 = vsub.f32 %v232_v15, %v240_v21 }
  0x9c   : > { %448 = vrsqrt.f32 %v249_v22  ;;  %v246_v25 = vmax.f32 %v244_v23, 0.0 }
  0x9e   : > { %v250_v26 = vadd.f32 1e-05, %v246_v25 }
  0xa0   : > { %450 = vrsqrt.f32 %v250_v26 }
  0xa6   : > { %v449_v27 = vpop.eup %448 }
  0xa7   : > { %255 = vrot.lane.b32.xlu1 %v449_v27, %s478_s14 }
  0xaa   : > { %v451_v28 = vpop.eup %450 }
  0xab   : > { %257 = vrot.lane.b32.xlu1 %v451_v28, %s478_s14 }
 0x119   : > { %v256_v30 = vpop.permute.xlu1 %255 }
 0x11a   : > { %v261_v31 = vmul.f32 %v256_v30, %v247_v29 }
 0x11c   : > { %275 = vperm.xlu0 %446, %v261_v31   ;;  %v265_v34 = vmul.f32 %v261_v31, %v231_v14 }
 0x11d   : > { %v258_v33 = vpop.permute.xlu1 %257 }
 0x11e   : > { %v262_v35 = vmul.f32 %v258_v33, %v248_v32  ;;  %v267_v39 = vsub.f32 %v263_v36, %v265_v34 }
 0x120   : > { %v266_v38 = vmul.f32 %v262_v35, %v232_v15  ;;  %280 = vperm.xlu1 %447, %v262_v35  }
 0x122   : > { %v268_v40 = vsub.f32 %v264_v37, %v266_v38 }
 0x124   : > { %289 = vperm.xlu1 %447, %v267_v39   ;;  %294 = vperm.xlu0 %446, %v268_v40  }
 0x19b   : > { %v276_v42 = vpop.permute.xlu0 %275 }
 0x19c   : > { %v283_v47 = vmul.f32 %v276_v42, %v269_v41  ;;  %v284_v48 = vmul.f32 %v276_v42, %v270_v43 }
 0x19f   : > { %v281_v44 = vpop.permute.xlu1 %280 }
 0x1a0   : > { %v285_v49 = vmul.f32 %v281_v44, %v271_v45  ;;  %v286_v50 = vmul.f32 %v281_v44, %v272_v46 }
 0x1a3   : > { %v290_v51 = vpop.permute.xlu1 %289  ;;  %v295_v52 = vpop.permute.xlu0 %294 }
 0x1a4   : > { %v297_v53 = vadd.f32 %v290_v51, %v283_v47  ;;  %v298_v54 = vadd.f32 %v290_v51, %v284_v48  ;;  %v299_v55 = vadd.f32 %v295_v52, %v285_v49  ;;  %v300_v56 = vadd.f32 %v295_v52, %v286_v50 }
 0x1a5   : > { %319 = sbr.rel (!%p534_p5) target bundleno = 436 (0x1b4), region = 63 }
 0x1a6   : > { %v301_v57 = vmul.f32 0.2, %v297_v53  ;;  %v302_v58 = vmul.f32 0.2, %v298_v54  ;;  %v303_v59 = vmul.f32 0.2, %v299_v55 }
 0x1a7   : > { %v304_v60 = vmul.f32 0.2, %v300_v56 }
 0x1a8   : > { %v305_v61 = vmax.f32 %v297_v53, %v301_v57  ;;  %v306_v62 = vmax.f32 %v298_v54, %v302_v58  ;;  %v307_v63 = vmax.f32 %v299_v55, %v303_v59 }
 0x1a9   : > { %v308_v0 = vmax.f32 %v300_v56, %v304_v60 }
 0x1aa   : > { %309 = vst [vmem:[%s217_s15] sm:$0xff] %v305_v61  ;;  %310 = vst [vmem:[%s217_s15 + $0x8] sm:$0xff] %v306_v62 }
 0x1ab   : > { %311 = vst [vmem:[%s217_s15 + $0x10] sm:$0xff] %v307_v63  ;;  %312 = vst [vmem:[%s217_s15 + $0x18] sm:$0xff] %v308_v0 }
 0x1b1   : > { %v335_v1 = vld [vmem:[%s217_s15] sm:$0xff]  ;;  %v337_v2 = vld [vmem:[%s217_s15 + $0x8] sm:$0xff] }
 0x1b2   : > { %v339_v3 = vld [vmem:[%s217_s15 + $0x10] sm:$0xff]  ;;  %v341_v4 = vld [vmem:[%s217_s15 + $0x18] sm:$0xff]  ;;  %336 = vst [vmem:[%s322_s10] sm:$0xff] %v335_v1  ;;  %338 = vst [vmem:[%s322_s10 + $0x8] sm:$0xff] %v337_v2 }
 0x1b3   : > { %340 = vst [vmem:[%s322_s10 + $0x20] sm:$0xff] %v339_v3  ;;  %342 = vst [vmem:[%s322_s10 + $0x28] sm:$0xff] %v341_v4 }
 0x1b4 PF: > { %p11_p10 = scmp.ge.s32.totalorder %s521_s19, 4   ;;  %s594_s15 = smov %s470_s16 }
 0x1b5   : > { %s595_s16 = smov %s532_s22  ;;  %s596_s17 = smov %s521_s19 }
 0x1b6   :  { %13 = sbr.rel (!%p11_p10) target bundleno = 2 (0x2), region = 117 }

// kernel: discriminator_forward.5
= control target key start
LH: loop header
LB: loop body
LE: loop exit
PB: predicated region body
PF: predicated region fallthrough
CT: control target
= control target key end

     0   :  { %s542_s12 = smov 0   ;;  %s544_s13 = smov 0   ;;  %s623_s0 = inlined_call_operand.vmem [shape: f32[16,16], index: 0, kind: input, shape index: {}]   ;;  %s624_s1 = inlined_call_operand.vmem [shape: f32[16,512], index: 1, kind: input, shape index: {}]   ;;  %s625_s2 = inlined_call_operand.vmem [shape: f32[16,512], index: 2, kind: output, shape index: {0}]   ;;  %s626_s3 = inlined_call_operand.vmem [shape: f32[2,16,2], index: 3, kind: output, shape index: {1}]  }
   0x1   :  { %s546_s14 = smov 0  }
   0x2 LB: > { %s558_s15 = sadd.s32 4294967295, %s519_s14   ;;  %s561_s16 = sadd.s32 1, %s519_s14   ;;  %s519_s14 = sphi %s546_s14, %s630_s14   ;;  %s515_s13 = sphi %s544_s13, %s629_s13   ;;  %s511_s12 = sphi %s542_s12, %s628_s12  }
   0x3   : > { %s39_s17 = ssub.s32 %s519_s14, %s561_s16  ;;  %s42_s18 = sadd.s32 1, %s515_s13 }
   0x4   : > { %p40_p0 = scmp.eq.s32.totalorder %s39_s17, 0  ;;  %p49_p1 = scmp.ne.s32.totalorder %s515_s13, %s511_s12 }
   0x5   : > { %p50_p2 = scmp.eq.s32.totalorder %s519_s14, 0  ;;  %p79_p3 = scmp.eq.s32.totalorder %s558_s15, 1 }
   0x6   : > { %s571_s19 = scalar_select %p40_p0, %s515_s13, %s42_s18  }
   0x7   : > { %p51_p4 = por %p50_p2, %p49_p1  ;;  %p573_p5 = por %p79_p3, %p49_p1 }
   0x8   : > { %p447_p6 = scmp.ge.s32.totalorder %s519_s14, 2 }
   0xa   : > { %130 = sbr.rel (%p447_p6) target bundleno = 24 (0x18), region = 20 }
  0x11   : > { %133 = sbr.rel (!%p51_p4) target bundleno = 24 (0x18), region = 24  ;;  %s135_s21 = sand.u32 (%p51_p4), 1, %s515_s13  }
  0x12   : > { %s463_s22 = sshll.u32 (%p51_p4), %s519_s14, 4  ;;  %s448_s23 = sshll.u32 (%p51_p4), %s135_s21, 5 }
  0x13   : > { %s140_s26 = scalar_lea.vmem (%p51_p4), %s624_s1, %s463_s22  ;;  %s137_s27 = scalar_lea.vmem (%p51_p4), [#allocation2], %s448_s23 }
  0x14   : > { %v153_v0 = vld [vmem:[%s140_s26] sm:$0xff] (%p51_p4)  ;;  %v155_v1 = vld [vmem:[%s140_s26 + $0x8] sm:$0xff] (%p51_p4) }
  0x15   : > { %v157_v2 = vld [vmem:[%s140_s26 + $0x20] sm:$0xff] (%p51_p4)  ;;  %154 = vst [vmem:[%s137_s27] sm:$0xff] (%p51_p4), %v153_v0  ;;  %156 = vst [vmem:[%s137_s27 + $0x8] sm:$0xff] (%p51_p4), %v155_v1  ;;  %v159_v3 = vld [vmem:[%s140_s26 + $0x28] sm:$0xff] (%p51_p4) }
  0x16   : > { %158 = vst [vmem:[%s137_s27 + $0x10] sm:$0xff] (%p51_p4), %v157_v2  ;;  %160 = vst [vmem:[%s137_s27 + $0x18] sm:$0xff] (%p51_p4), %v159_v3 }
  0x18 PF: > { %p451_p7 = scmp.ge.s32.totalorder %s519_s14, 1  ;;  %p165_p8 = scmp.lt.s32.totalorder %s519_s14, 3 }
  0x1a   : > { %p166_p9 = pnand %p451_p7, %p165_p8 }
  0x1b   : > { %s172_s28 = sand.u32 (!%p166_p9), 1, %s511_s12   ;;  %v521_v4 = vmov (!%p166_p9), 0.0   ;;  %v206_v11 = vld [vmem:[%s623_s0] sm:$0xff] (!%p166_p9)  ;;  %vm212_vm0 = vcmask (!%p166_p9), 130048   ;;  %v207_v12 = vld [vmem:[%s623_s0 + $0x8] sm:$0xff] (!%p166_p9)  ;;  %p201_p10 = scmp.lt.s32.totalorder (!%p166_p9), %s558_s15, 1 }
  0x1c   : > { %169 = sbr.rel (%p166_p9) target bundleno = 402 (0x192), region = 47  ;;  %s452_s29 = sshll.u32 (!%p166_p9), %s172_s28, 5  ;;  %283 = vmatprep.mubr.f32.mxu0 (!%p166_p9), %v521_v4  ;;  %289 = vmatprep.mubr.f32.mxu1 (!%p166_p9), %v521_v4  ;;  %vm316_vm1 = vcmask (!%p166_p9), 7168   ;;  %vm319_vm2 = vcmask (!%p166_p9), 15360  }
  0x1d   : > { %s174_s30 = scalar_lea.vmem (!%p166_p9), [#allocation2], %s452_s29  ;;  %s592_s8 = scalar_lea.vmem (!%p166_p9), [#allocation3], %s452_s29 }
  0x1e   : > { %v209_v5 = vld [vmem:[%s174_s30 + $0x8] sm:$0xff] (!%p166_p9)  ;;  %v211_v6 = vld [vmem:[%s174_s30 + $0x18] sm:$0xff] (!%p166_p9)  ;;  %v208_v7 = vld [vmem:[%s174_s30] sm:$0xff] (!%p166_p9) }
  0x1f   : > { %v466_v8 = vpack.c.bf16 (!%p166_p9), %v211_v6, %v209_v5  ;;  %v210_v9 = vld [vmem:[%s174_s30 + $0x10] sm:$0xff] (!%p166_p9) }
  0x20   : > { %v468_v10 = vpack.c.bf16 (!%p166_p9), %v210_v9, %v208_v7 }
  0x21   : > { %467 = vmatprep.subr.bf16.mxu0 (!%p166_p9), %v466_v8  ;;  %470 = vmatprep.subr.bf16.mxu1 (!%p166_p9), %v466_v8 }
  0x22   : > { %469 = vmatpush1.bf16.msra.mxu0 (!%p166_p9), %v468_v10  ;;  %471 = vmatpush1.bf16.msra.mxu1 (!%p166_p9), %v468_v10 }
  0x23   : > { %s202_s9 = scalar_select %p201_p10, %s558_s15, 1 }
  0x24   : > { %s465_s17 = sshll.u32 (%p573_p5), %s558_s15, 4 }
  0x25   : > { %456 = vmatmul.mubr.msk.f32.vlgmr.msra.gmra.mrb[0].mxu0 %vm212_vm0, %v206_v11  ;;  %457 = vmatmul.mubr.msk.f32.vlgmr.msra.gmra.mrb[0].mxu1 %vm212_vm0, %v207_v12  ;;  %s464_s10 = sshll.u32 %s202_s9, 4  ;;  %s336_s22 = scalar_lea.vmem (%p573_p5), %s625_s2, %s465_s17 }
  0x26   : > { %s205_s14 = scalar_lea.vmem %s626_s3, %s464_s10 }
  0xf8   : > { %v285_v13 = vpop.f32.mrb[0].mxu0  ;;  %v291_v14 = vpop.f32.mrb[0].mxu1 }
  0xf9   : > { %296 = vst [vmem:[%s592_s8] sm:$0xff] %v285_v13  ;;  %v287_v15 = vpop.f32.mrb[1].mxu0  ;;  %298 = vst [vmem:[%s592_s8 + $0x10] sm:$0xff] %v291_v14  ;;  %v293_v16 = vpop.f32.mrb[1].mxu1  ;;  %v306_v17 = vmul.f32 %v285_v13, %v285_v13  ;;  %v308_v18 = vmul.f32 %v291_v14, %v291_v14 }
  0xfa   : > { %297 = vst [vmem:[%s592_s8 + $0x8] sm:$0xff] %v287_v15  ;;  %v307_v19 = vmul.f32 %v287_v15, %v287_v15  ;;  %299 = vst [vmem:[%s592_s8 + $0x18] sm:$0xff] %v293_v16  ;;  %v309_v20 = vmul.f32 %v293_v16, %v293_v16  ;;  %v300_v21 = vadd.f32 %v287_v15, %v285_v13 }
  0xfb   : > { %v303_v22 = vadd.f32 %v293_v16, %v291_v14 }
  0xfc   : > { %301 = vadd.xlane.f32.xlu0 %v300_v21  ;;  %v310_v23 = vadd.f32 %v307_v19, %v306_v17  ;;  %v313_v24 = vadd.f32 %v309_v20, %v308_v18 }
  0xfe   : > { %311 = vadd.xlane.f32.xlu1 %v310_v23 }
 0x100   : > { %304 = vadd.xlane.f32.xlu0 %v303_v22  ;;  %v349_v31 = vld [vmem:[%s592_s8] sm:$0xff] (%p573_p5)  ;;  %v353_v33 = vld [vmem:[%s592_s8 + $0x10] sm:$0xff] (%p573_p5) }
 0x101   : > { %v351_v32 = vld [vmem:[%s592_s8 + $0x8] sm:$0xff] (%p573_p5)  ;;  %v355_v34 = vld [vmem:[%s592_s8 + $0x18] sm:$0xff] (%p573_p5)  ;;  %350 = vst [vmem:[%s336_s22] sm:$0xff] (%p573_p5), %v349_v31  ;;  %354 = vst [vmem:[%s336_s22 + $0x20] sm:$0xff] (%p573_p5), %v353_v33 }
 0x102   : > { %314 = vadd.xlane.f32.xlu1 %v313_v24  ;;  %352 = vst [vmem:[%s336_s22 + $0x8] sm:$0xff] (%p573_p5), %v351_v32  ;;  %356 = vst [vmem:[%s336_s22 + $0x28] sm:$0xff] (%p573_p5), %v355_v34 }
 0x189   : > { %v302_v25 = vpop.xlane.xlu0 %301 }
 0x18b   : > { %v312_v26 = vpop.xlane.xlu1 %311  ;;  %333 = sbr.rel (!%p573_p5) target bundleno = 402 (0x192), region = 55 }
 0x18c   : > { %v317_v27 = vsel %vm316_vm1, %v302_v25, %v312_v26 }
 0x18d   : > { %320 = vst.msk [vmem:[%s205_s14] sm:$0xff] %vm319_vm2, %v317_v27  ;;  %v305_v28 = vpop.xlane.xlu0 %304 }
 0x18f   : > { %v315_v29 = vpop.xlane.xlu1 %314 }
 0x190   : > { %v318_v30 = vsel %vm316_vm1, %v305_v28, %v315_v29 }
 0x191   : > { %321 = vst.msk [vmem:[%s205_s14 + $0x8] sm:$0xff] %vm319_vm2, %v318_v30 }
 0x192 PF: > { %p11_p11 = scmp.ge.s32.totalorder %s561_s16, 4   ;;  %s628_s12 = smov %s515_s13 }
 0x193   : > { %s629_s13 = smov %s571_s19  ;;  %s630_s14 = smov %s561_s16 }
 0x194   :  { %13 = sbr.rel (!%p11_p11) target bundleno = 2 (0x2), region = 121 }

// kernel: discriminator_forward.7
= control target key start
LH: loop header
LB: loop body
LE: loop exit
PB: predicated region body
PF: predicated region fallthrough
CT: control target
= control target key end

     0   :  { %vm162_vm0 = vcmask 7168   ;;  %vm167_vm1 = vcmask 15360   ;;  %s436_s1 = inlined_call_operand.vmem [shape: f32[256,128], index: 1, kind: input, shape index: {}]   ;;  %s437_s0 = inlined_call_operand.vmem [shape: f32[32,256], index: 0, kind: input, shape index: {}]   ;;  %s438_s2 = inlined_call_operand.vmem [shape: f32[32,128], index: 2, kind: output, shape index: {0}]   ;;  %s439_s3 = inlined_call_operand.vmem [shape: f32[1,32,2], index: 3, kind: output, shape index: {1}]  }
   0x1   :  { %v37_v0 = vld [vmem:[%s436_s1 + $0x80] sm:$0xff]  ;;  %v38_v1 = vld [vmem:[%s436_s1 + $0x88] sm:$0xff]  ;;  %v39_v5 = vld [vmem:[%s436_s1 + $0x90] sm:$0xff] }
   0x2   :  { %v21_v2 = vld [vmem:[%s436_s1] sm:$0xff]  ;;  %v224_v3 = vpack.c.bf16 %v38_v1, %v37_v0  ;;  %v22_v4 = vld [vmem:[%s436_s1 + $0x8] sm:$0xff]  ;;  %v40_v6 = vld [vmem:[%s436_s1 + $0x98] sm:$0xff] }
   0x3   :  { %v226_v7 = vpack.c.bf16 %v22_v4, %v21_v2  ;;  %v228_v8 = vpack.c.bf16 %v40_v6, %v39_v5  ;;  %v23_v9 = vld [vmem:[%s436_s1 + $0x10] sm:$0xff]  ;;  %v24_v10 = vld [vmem:[%s436_s1 + $0x18] sm:$0xff]  ;;  %v41_v11 = vld [vmem:[%s436_s1 + $0xa0] sm:$0xff] }
   0x4   :  { %225 = vmatprep.subr.bf16.mxu0 %v224_v3  ;;  %256 = vmatprep.subr.bf16.mxu1 %v224_v3  ;;  %v42_v12 = vld [vmem:[%s436_s1 + $0xa8] sm:$0xff]  ;;  %v230_v13 = vpack.c.bf16 %v24_v10, %v23_v9  ;;  %v25_v15 = vld [vmem:[%s436_s1 + $0x20] sm:$0xff]  ;;  %v43_v17 = vld [vmem:[%s436_s1 + $0xb0] sm:$0xff] }
   0x5   :  { %227 = vmatpush3.bf16.msra.mxu0 %v226_v7  ;;  %264 = vmatpush3.bf16.msra.mxu1 %v226_v7  ;;  %v232_v14 = vpack.c.bf16 %v42_v12, %v41_v11  ;;  %v26_v16 = vld [vmem:[%s436_s1 + $0x28] sm:$0xff]  ;;  %v44_v18 = vld [vmem:[%s436_s1 + $0xb8] sm:$0xff]  ;;  %v27_v21 = vld [vmem:[%s436_s1 + $0x30] sm:$0xff] }
   0x6   :  { %229 = vmatprep.subr.bf16.mxu0 %v228_v8  ;;  %257 = vmatprep.subr.bf16.mxu1 %v228_v8  ;;  %v234_v19 = vpack.c.bf16 %v26_v16, %v25_v15  ;;  %v236_v20 = vpack.c.bf16 %v44_v18, %v43_v17  ;;  %v28_v22 = vld [vmem:[%s436_s1 + $0x38] sm:$0xff]  ;;  %v45_v23 = vld [vmem:[%s436_s1 + $0xc0] sm:$0xff]  ;;  %v46_v24 = vld [vmem:[%s436_s1 + $0xc8] sm:$0xff] }
   0x7   :  { %v14_v25 = vld [vmem:[%s437_s0 + $0x8] sm:$0xff]  ;;  %v238_v27 = vpack.c.bf16 %v28_v22, %v27_v21  ;;  %v240_v28 = vpack.c.bf16 %v46_v24, %v45_v23  ;;  %v29_v29 = vld [vmem:[%s436_s1 + $0x40] sm:$0xff]  ;;  %v47_v31 = vld [vmem:[%s436_s1 + $0xd0] sm:$0xff] }
   0x8   :  { %117 = vmatprep.mubr.f32.mxu0 %v14_v25  ;;  %v18_v26 = vld [vmem:[%s437_s0 + $0x28] sm:$0xff]  ;;  %v48_v32 = vld [vmem:[%s436_s1 + $0xd8] sm:$0xff]  ;;  %v31_v35 = vld [vmem:[%s436_s1 + $0x50] sm:$0xff] }
   0x9   :  { %231 = vmatpush3.bf16.msra.mxu0 %v230_v13  ;;  %265 = vmatpush3.bf16.msra.mxu1 %v230_v13  ;;  %v30_v30 = vld [vmem:[%s436_s1 + $0x48] sm:$0xff]  ;;  %v244_v34 = vpack.c.bf16 %v48_v32, %v47_v31  ;;  %v32_v36 = vld [vmem:[%s436_s1 + $0x58] sm:$0xff]  ;;  %v49_v37 = vld [vmem:[%s436_s1 + $0xe0] sm:$0xff] }
   0xa   :  { %233 = vmatprep.subr.bf16.mxu0 %v232_v14  ;;  %258 = vmatprep.subr.bf16.mxu1 %v232_v14  ;;  %v242_v33 = vpack.c.bf16 %v30_v30, %v29_v29  ;;  %v50_v38 = vld [vmem:[%s436_s1 + $0xe8] sm:$0xff]  ;;  %v246_v39 = vpack.c.bf16 %v32_v36, %v31_v35  ;;  %v33_v41 = vld [vmem:[%s436_s1 + $0x60] sm:$0xff]  ;;  %v51_v43 = vld [vmem:[%s436_s1 + $0xf0] sm:$0xff] }
   0xb   :  { %127 = vmatprep.mubr.f32.mxu1 %v18_v26  ;;  %v248_v40 = vpack.c.bf16 %v50_v38, %v49_v37  ;;  %v34_v42 = vld [vmem:[%s436_s1 + $0x68] sm:$0xff]  ;;  %v52_v44 = vld [vmem:[%s436_s1 + $0xf8] sm:$0xff]  ;;  %v35_v47 = vld [vmem:[%s436_s1 + $0x70] sm:$0xff] }
   0xc   :  { %v250_v45 = vpack.c.bf16 %v34_v42, %v33_v41  ;;  %v252_v46 = vpack.c.bf16 %v52_v44, %v51_v43  ;;  %v36_v48 = vld [vmem:[%s436_s1 + $0x78] sm:$0xff]  ;;  %v13_v50 = vld [vmem:[%s437_s0] sm:$0xff]  ;;  %v19_v54 = vld [vmem:[%s437_s0 + $0x30] sm:$0xff] }
   0xd   :  { %235 = vmatpush3.bf16.msra.mxu0 %v234_v19  ;;  %266 = vmatpush3.bf16.msra.mxu1 %v234_v19  ;;  %v254_v49 = vpack.c.bf16 %v36_v48, %v35_v47  ;;  %v17_v51 = vld [vmem:[%s437_s0 + $0x20] sm:$0xff]  ;;  %v20_v52 = vld [vmem:[%s437_s0 + $0x38] sm:$0xff]  ;;  %v15_v55 = vld [vmem:[%s437_s0 + $0x10] sm:$0xff] }
   0xe   :  { %237 = vmatprep.subr.bf16.mxu0 %v236_v20  ;;  %259 = vmatprep.subr.bf16.mxu1 %v236_v20  ;;  %v16_v53 = vld [vmem:[%s437_s0 + $0x18] sm:$0xff] }
  0x11   :  { %239 = vmatpush3.bf16.msra.mxu0 %v238_v27  ;;  %267 = vmatpush3.bf16.msra.mxu1 %v238_v27 }
  0x12   :  { %241 = vmatprep.subr.bf16.mxu0 %v240_v28  ;;  %260 = vmatprep.subr.bf16.mxu1 %v240_v28 }
  0x15   :  { %243 = vmatpush3.bf16.msra.mxu0 %v242_v33  ;;  %268 = vmatpush3.bf16.msra.mxu1 %v242_v33 }
  0x16   :  { %245 = vmatprep.subr.bf16.mxu0 %v244_v34  ;;  %261 = vmatprep.subr.bf16.mxu1 %v244_v34 }
  0x19   :  { %247 = vmatpush3.bf16.msra.mxu0 %v246_v39  ;;  %269 = vmatpush3.bf16.msra.mxu1 %v246_v39 }
  0x1a   :  { %249 = vmatprep.subr.bf16.mxu0 %v248_v40  ;;  %262 = vmatprep.subr.bf16.mxu1 %v248_v40 }
  0x1d   :  { %251 = vmatpush3.bf16.msra.mxu0 %v250_v45  ;;  %270 = vmatpush3.bf16.msra.mxu1 %v250_v45 }
  0x1e   :  { %253 = vmatprep.subr.bf16.mxu0 %v252_v46  ;;  %263 = vmatprep.subr.bf16.mxu1 %v252_v46 }
  0x21   :  { %255 = vmatpush3.bf16.msra.mxu0 %v254_v49  ;;  %271 = vmatpush3.bf16.msra.mxu1 %v254_v49 }
  0x24   :  { %118 = vmatmul.mubr.f32.vlgmr.msra.gmra.mrb[0].mxu0 %v13_v50  ;;  %128 = vmatmul.mubr.f32.vlgmr.msra.gmra.mrb[0].mxu1 %v17_v51 }
  0x25   :  { %132 = vmatprep.mubr.f32.mxu1 %v20_v52  ;;  %122 = vmatprep.mubr.f32.mxu0 %v16_v53 }
  0x28   :  { %133 = vmatmul.mubr.f32.gmra.mrb[2].mxu1 %v19_v54  ;;  %123 = vmatmul.mubr.f32.gmra.mrb[2].mxu0 %v15_v55 }
  0xf7   :  { %v212_v56 = vpop.f32.mrb[0].mxu0  ;;  %v218_v57 = vpop.f32.mrb[0].mxu1 }
  0xf8   :  { %v213_v58 = vpop.f32.mrb[1].mxu0  ;;  %v219_v59 = vpop.f32.mrb[1].mxu1 }
  0xf9   :  { %v214_v60 = vadd.f32 %v213_v58, %v212_v56  ;;  %v220_v61 = vadd.f32 %v219_v59, %v218_v57 }
  0xfb   :  { %138 = vst [vmem:[%s438_s2] sm:$0xff] %v214_v60  ;;  %140 = vst [vmem:[%s438_s2 + $0x10] sm:$0xff] %v220_v61  ;;  %v221_v62 = vpop.f32.mrb[2].mxu1  ;;  %146 = vadd.xlane.f32.xlu1 %v220_v61  ;;  %142 = vadd.xlane.f32.xlu0 %v214_v60  ;;  %v215_v63 = vpop.f32.mrb[2].mxu0  ;;  %v150_v4 = vmul.f32 %v214_v60, %v214_v60  ;;  %v152_v7 = vmul.f32 %v220_v61, %v220_v61 }
  0xfc   :  { %v222_v0 = vpop.f32.mrb[3].mxu1  ;;  %v216_v1 = vpop.f32.mrb[3].mxu0 }
  0xfd   :  { %v223_v2 = vadd.f32 %v222_v0, %v221_v62  ;;  %v217_v3 = vadd.f32 %v216_v1, %v215_v63 }
  0xff   :  { %141 = vst [vmem:[%s438_s2 + $0x18] sm:$0xff] %v223_v2  ;;  %139 = vst [vmem:[%s438_s2 + $0x8] sm:$0xff] %v217_v3  ;;  %148 = vadd.xlane.f32.xlu1 %v223_v2  ;;  %154 = vadd.xlane.f32.xlu0 %v150_v4  ;;  %v151_v5 = vmul.f32 %v217_v3, %v217_v3  ;;  %v153_v6 = vmul.f32 %v223_v2, %v223_v2 }
 0x103   :  { %156 = vadd.xlane.f32.xlu1 %v151_v5  ;;  %144 = vadd.xlane.f32.xlu0 %v217_v3 }
 0x107   :  { %160 = vadd.xlane.f32.xlu1 %v153_v6  ;;  %158 = vadd.xlane.f32.xlu0 %v152_v7 }
 0x188   :  { %v147_v8 = vpop.xlane.xlu1 %146  ;;  %v143_v9 = vpop.xlane.xlu0 %142 }
 0x18c   :  { %v149_v10 = vpop.xlane.xlu1 %148  ;;  %v155_v11 = vpop.xlane.xlu0 %154 }
 0x18d   :  { %v163_v12 = vsel %vm162_vm0, %v143_v9, %v155_v11 }
 0x18e   :  { %168 = vst.msk [vmem:[%s439_s3] sm:$0xff] %vm167_vm1, %v163_v12 }
 0x190   :  { %v157_v13 = vpop.xlane.xlu1 %156  ;;  %v145_v14 = vpop.xlane.xlu0 %144 }
 0x191   :  { %v164_v15 = vsel %vm162_vm0, %v145_v14, %v157_v13 }
 0x192   :  { %169 = vst.msk [vmem:[%s439_s3 + $0x8] sm:$0xff] %vm167_vm1, %v164_v15 }
 0x194   :  { %v161_v16 = vpop.xlane.xlu1 %160  ;;  %v159_v17 = vpop.xlane.xlu0 %158 }
 0x195   :  { %v166_v18 = vsel %vm162_vm0, %v149_v10, %v161_v16  ;;  %v165_v19 = vsel %vm162_vm0, %v147_v8, %v159_v17 }
 0x196   :  { %171 = vst.msk [vmem:[%s439_s3 + $0x18] sm:$0xff] %vm167_vm1, %v166_v18  ;;  %170 = vst.msk [vmem:[%s439_s3 + $0x10] sm:$0xff] %vm167_vm1, %v165_v19 }

// kernel: discriminator_forward.8
= control target key start
LH: loop header
LB: loop body
LE: loop exit
PB: predicated region body
PF: predicated region fallthrough
CT: control target
= control target key end

     0   :  { %s182_s23 = smov 1   ;;  %v183_v26 = vmov 0   ;;  %s282_s0 = inlined_call_operand.vmem [shape: f32[1,32,2], index: 0, kind: input, shape index: {}]   ;;  %s283_s1 = inlined_call_operand.vmem [shape: f32[32,1], index: 1, kind: input, shape index: {}]   ;;  %s284_s2 = inlined_call_operand.vmem [shape: f32[32,1], index: 2, kind: input, shape index: {}]   ;;  %s285_s3 = inlined_call_operand.vmem [shape: f32[32,128], index: 3, kind: input, shape index: {}]   ;;  %s286_s4 = inlined_call_operand.vmem [shape: f32[32,128], index: 4, kind: output, shape index: {}]  }
   0x1   :  { %v17_v0 = vld [vmem:[%s282_s0] sm:$0xff]  ;;  %v19_v1 = vld [vmem:[%s282_s0 + $0x10] sm:$0xff]  ;;  %v18_v2 = vld [vmem:[%s282_s0 + $0x8] sm:$0xff]  ;;  %172 = vset.pattern.permute.xlu0 %v183_v26  ;;  %173 = vset.pattern.permute.xlu1 %v183_v26 }
   0x2   :  { %v25_v3 = vmul.f32 0.02, %v17_v0  ;;  %v219_v4 = vmul.f32 0.02, %v19_v1  ;;  %v26_v5 = vmul.f32 0.02, %v18_v2 }
   0x3   :  { %v20_v6 = vld [vmem:[%s282_s0 + $0x18] sm:$0xff]  ;;  %s184_s0 = smov 127   ;;  %v57_v33 = vld [vmem:[%s283_s1] sm:$0xff]  ;;  %v58_v36 = vld [vmem:[%s283_s1 + $0x8] sm:$0xff] }
   0x4   :  { %v29_v7 = vmul.f32 %v25_v3, %v25_v3  ;;  %v31_v8 = vmul.f32 %v219_v4, %v219_v4  ;;  %v226_v9 = vmul.f32 0.02, %v20_v6  ;;  %v30_v10 = vmul.f32 %v26_v5, %v26_v5  ;;  %v59_v39 = vld [vmem:[%s283_s1 + $0x10] sm:$0xff]  ;;  %v60_v41 = vld [vmem:[%s283_s1 + $0x18] sm:$0xff]  ;;  %v90_v47 = vld [vmem:[%s284_s2 + $0x8] sm:$0xff] }
   0x5   :  { %v89_v48 = vld [vmem:[%s284_s2] sm:$0xff]  ;;  %v92_v53 = vld [vmem:[%s284_s2 + $0x18] sm:$0xff]  ;;  %v91_v54 = vld [vmem:[%s284_s2 + $0x10] sm:$0xff] }
   0x6   :  { %37 = vrot.lane.b32.xlu0 %v29_v7, %s182_s23  ;;  %41 = vrot.lane.b32.xlu1 %v31_v8, %s182_s23  ;;  %v32_v11 = vmul.f32 %v226_v9, %v226_v9  ;;  %v101_v59 = vld [vmem:[%s285_s3] sm:$0xff]  ;;  %v102_v60 = vld [vmem:[%s285_s3 + $0x8] sm:$0xff] }
   0x7   :  { %v103_v1 = vld [vmem:[%s285_s3 + $0x10] sm:$0xff]  ;;  %v104_v2 = vld [vmem:[%s285_s3 + $0x18] sm:$0xff] }
   0xa   :  { %39 = vrot.lane.b32.xlu0 %v30_v10, %s182_s23  ;;  %43 = vrot.lane.b32.xlu1 %v32_v11, %s182_s23 }
  0x78   :  { %v38_v12 = vpop.permute.xlu0 %37  ;;  %v42_v13 = vpop.permute.xlu1 %41 }
  0x79   :  { %v49_v14 = vsub.f32 %v25_v3, %v38_v12  ;;  %v51_v15 = vsub.f32 %v219_v4, %v42_v13 }
  0x7b   :  { %v53_v16 = vmax.f32 %v49_v14, 0.0  ;;  %v55_v17 = vmax.f32 %v51_v15, 0.0 }
  0x7c   :  { %v40_v18 = vpop.permute.xlu0 %39  ;;  %v44_v19 = vpop.permute.xlu1 %43 }
  0x7d   :  { %v61_v20 = vadd.f32 1e-05, %v53_v16  ;;  %v63_v21 = vadd.f32 1e-05, %v55_v17  ;;  %v50_v22 = vsub.f32 %v26_v5, %v40_v18  ;;  %v52_v23 = vsub.f32 %v226_v9, %v44_v19 }
  0x7f   :  { %174 = vrsqrt.f32 %v61_v20  ;;  %v54_v24 = vmax.f32 %v50_v22, 0.0  ;;  %v56_v25 = vmax.f32 %v52_v23, 0.0 }
  0x80   :  { %176 = vrsqrt.f32 %v63_v21 }
  0x81   :  { %v62_v27 = vadd.f32 1e-05, %v54_v24  ;;  %v64_v28 = vadd.f32 1e-05, %v56_v25 }
  0x83   :  { %178 = vrsqrt.f32 %v62_v27 }
  0x84   :  { %180 = vrsqrt.f32 %v64_v28 }
  0x89   :  { %v175_v29 = vpop.eup %174 }
  0x8a   :  { %73 = vrot.lane.b32.xlu0 %v175_v29, %s184_s0  ;;  %v177_v30 = vpop.eup %176 }
  0x8d   :  { %v179_v31 = vpop.eup %178 }
  0x8e   :  { %77 = vrot.lane.b32.xlu0 %v177_v30, %s184_s0  ;;  %75 = vrot.lane.b32.xlu1 %v179_v31, %s184_s0  ;;  %v181_v32 = vpop.eup %180 }
  0x92   :  { %79 = vrot.lane.b32.xlu1 %v181_v32, %s184_s0 }
  0xfc   :  { %v74_v34 = vpop.permute.xlu0 %73 }
  0xfd   :  { %v85_v35 = vmul.f32 %v74_v34, %v57_v33 }
  0xff   :  { %107 = vperm.xlu0 %172, %v85_v35   ;;  %v93_v43 = vmul.f32 %v85_v35, %v25_v3 }
 0x100   :  { %v76_v37 = vpop.permute.xlu1 %75  ;;  %v78_v40 = vpop.permute.xlu0 %77 }
 0x101   :  { %v86_v38 = vmul.f32 %v76_v37, %v58_v36  ;;  %v87_v45 = vmul.f32 %v78_v40, %v59_v39  ;;  %v97_v52 = vsub.f32 %v89_v48, %v93_v43 }
 0x103   :  { %112 = vperm.xlu1 %173, %v86_v38   ;;  %v94_v44 = vmul.f32 %v86_v38, %v26_v5  ;;  %v95_v49 = vmul.f32 %v87_v45, %v219_v4 }
 0x104   :  { %v80_v42 = vpop.permute.xlu1 %79 }
 0x105   :  { %v88_v46 = vmul.f32 %v80_v42, %v60_v41  ;;  %v98_v51 = vsub.f32 %v90_v47, %v94_v44  ;;  %v99_v56 = vsub.f32 %v91_v54, %v95_v49 }
 0x107   :  { %122 = vperm.xlu0 %172, %v88_v46   ;;  %117 = vperm.xlu1 %173, %v87_v45   ;;  %v96_v50 = vmul.f32 %v88_v46, %v226_v9 }
 0x109   :  { %v100_v55 = vsub.f32 %v92_v53, %v96_v50 }
 0x10b   :  { %136 = vperm.xlu0 %172, %v98_v51   ;;  %131 = vperm.xlu1 %173, %v97_v52  }
 0x10f   :  { %146 = vperm.xlu0 %172, %v100_v55   ;;  %141 = vperm.xlu1 %173, %v99_v56  }
 0x17e   :  { %v108_v57 = vpop.permute.xlu0 %107 }
 0x17f   :  { %v125_v63 = vmul.f32 %v108_v57, %v101_v59 }
 0x182   :  { %v113_v58 = vpop.permute.xlu1 %112 }
 0x183   :  { %v126_v0 = vmul.f32 %v113_v58, %v102_v60 }
 0x186   :  { %v118_v61 = vpop.permute.xlu1 %117  ;;  %v123_v62 = vpop.permute.xlu0 %122 }
 0x187   :  { %v127_v7 = vmul.f32 %v118_v61, %v103_v1  ;;  %v128_v8 = vmul.f32 %v123_v62, %v104_v2 }
 0x18a   :  { %v132_v3 = vpop.permute.xlu1 %131  ;;  %v137_v4 = vpop.permute.xlu0 %136 }
 0x18b   :  { %v149_v5 = vadd.f32 %v132_v3, %v125_v63  ;;  %v150_v6 = vadd.f32 %v137_v4, %v126_v0 }
 0x18d   :  { %v153_v9 = vmul.f32 0.2, %v149_v5  ;;  %v154_v10 = vmul.f32 0.2, %v150_v6 }
 0x18e   :  { %v142_v11 = vpop.permute.xlu1 %141  ;;  %v147_v12 = vpop.permute.xlu0 %146 }
 0x18f   :  { %v157_v13 = vmax.f32 %v149_v5, %v153_v9  ;;  %v158_v14 = vmax.f32 %v150_v6, %v154_v10  ;;  %v151_v15 = vadd.f32 %v142_v11, %v127_v7  ;;  %v152_v16 = vadd.f32 %v147_v12, %v128_v8 }
 0x191   :  { %161 = vst [vmem:[%s286_s4] sm:$0xff] %v157_v13  ;;  %162 = vst [vmem:[%s286_s4 + $0x8] sm:$0xff] %v158_v14  ;;  %v155_v17 = vmul.f32 0.2, %v151_v15  ;;  %v156_v18 = vmul.f32 0.2, %v152_v16 }
 0x193   :  { %v159_v19 = vmax.f32 %v151_v15, %v155_v17  ;;  %v160_v20 = vmax.f32 %v152_v16, %v156_v18 }
 0x195   :  { %163 = vst [vmem:[%s286_s4 + $0x10] sm:$0xff] %v159_v19  ;;  %164 = vst [vmem:[%s286_s4 + $0x18] sm:$0xff] %v160_v20 }

// kernel: discriminator_forward.9
= control target key start
LH: loop header
LB: loop body
LE: loop exit
PB: predicated region body
PF: predicated region fallthrough
CT: control target
= control target key end

     0   :  { %v393_v3 = vmov 0   ;;  %v87_v49 = vlaneseq  ;;  %s621_s2 = inlined_call_operand.vmem [shape: f32[512,128], index: 2, kind: input, shape index: {}]   ;;  %s622_s1 = inlined_call_operand.<no memory space> [shape: f32[1,1], index: 1, kind: input, shape index: {}]   ;;  %s623_s0 = inlined_call_operand.vmem [shape: f32[1,512], index: 0, kind: input, shape index: {}]   ;;  %s624_s3 = inlined_call_operand.vmem [shape: f32[1,128], index: 3, kind: output, shape index: {}]  }
   0x1   :  { %v33_v0 = vld [vmem:[%s621_s2 + $0x80] sm:$0xff]  ;;  %v34_v1 = vld [vmem:[%s621_s2 + $0x88] sm:$0xff]  ;;  %392 = vset.pattern.permute.xlu0 %v393_v3  ;;  %v8_v4 = vstv %s622_s1  ;;  %v35_v13 = vld [vmem:[%s621_s2 + $0x90] sm:$0xff] }
   0x2   :  { %v17_v2 = vld [vmem:[%s621_s2] sm:$0xff]  ;;  %v327_v5 = vpack.c.bf16 %v34_v1, %v33_v0  ;;  %v18_v6 = vld [vmem:[%s621_s2 + $0x8] sm:$0xff]  ;;  %9 = vst [vmem:[#allocation2] sm:$0x1] %v8_v4  ;;  %v36_v15 = vld [vmem:[%s621_s2 + $0x98] sm:$0xff]  ;;  %v543_v63 = vshrl.u32 %v87_v49, 7 }
   0x3   :  { %v65_v7 = vld [vmem:[%s621_s2 + $0x180] sm:$0xff]  ;;  %v66_v8 = vld [vmem:[%s621_s2 + $0x188] sm:$0xff]  ;;  %v329_v9 = vpack.c.bf16 %v18_v6, %v17_v2  ;;  %v19_v16 = vld [vmem:[%s621_s2 + $0x10] sm:$0xff]  ;;  %v331_v18 = vpack.c.bf16 %v36_v15, %v35_v13 }
   0x4   :  { %v359_v10 = vpack.c.bf16 %v66_v8, %v65_v7  ;;  %v49_v11 = vld [vmem:[%s621_s2 + $0x100] sm:$0xff]  ;;  %v50_v12 = vld [vmem:[%s621_s2 + $0x108] sm:$0xff]  ;;  %328 = vmatprep.subr.bf16.mxu0 %v327_v5  ;;  %v20_v17 = vld [vmem:[%s621_s2 + $0x18] sm:$0xff]  ;;  %v106_v13 = vsub.s32 3, %v543_v63 }
   0x5   :  { %v361_v14 = vpack.c.bf16 %v50_v12, %v49_v11  ;;  %330 = vmatpush3.bf16.msra.mxu0 %v329_v9  ;;  %v333_v19 = vpack.c.bf16 %v20_v17, %v19_v16  ;;  %v67_v20 = vld [vmem:[%s621_s2 + $0x190] sm:$0xff]  ;;  %v68_v21 = vld [vmem:[%s621_s2 + $0x198] sm:$0xff]  ;;  %v37_v25 = vld [vmem:[%s621_s2 + $0xa0] sm:$0xff]  ;;  %v98_v12 = vsub.s32 1, %v543_v63 }
   0x6   :  { %360 = vmatprep.subr.bf16.mxu1 %v359_v10  ;;  %v51_v22 = vld [vmem:[%s621_s2 + $0x110] sm:$0xff]  ;;  %v363_v23 = vpack.c.bf16 %v68_v21, %v67_v20  ;;  %v52_v24 = vld [vmem:[%s621_s2 + $0x118] sm:$0xff]  ;;  %v38_v26 = vld [vmem:[%s621_s2 + $0xa8] sm:$0xff]  ;;  %332 = vmatprep.subr.bf16.mxu0 %v331_v18 }
   0x7   :  { %362 = vmatpush3.bf16.msra.mxu1 %v361_v14  ;;  %v365_v27 = vpack.c.bf16 %v52_v24, %v51_v22  ;;  %v335_v28 = vpack.c.bf16 %v38_v26, %v37_v25  ;;  %v21_v29 = vld [vmem:[%s621_s2 + $0x20] sm:$0xff]  ;;  %v22_v30 = vld [vmem:[%s621_s2 + $0x28] sm:$0xff]  ;;  %v39_v37 = vld [vmem:[%s621_s2 + $0xb0] sm:$0xff] }
   0x8   :  { %v69_v31 = vld [vmem:[%s621_s2 + $0x1a0] sm:$0xff]  ;;  %364 = vmatprep.subr.bf16.mxu1 %v363_v23  ;;  %v70_v32 = vld [vmem:[%s621_s2 + $0x1a8] sm:$0xff]  ;;  %v337_v35 = vpack.c.bf16 %v22_v30, %v21_v29  ;;  %v40_v38 = vld [vmem:[%s621_s2 + $0xb8] sm:$0xff] }
   0x9   :  { %v53_v33 = vld [vmem:[%s621_s2 + $0x120] sm:$0xff]  ;;  %v54_v34 = vld [vmem:[%s621_s2 + $0x128] sm:$0xff]  ;;  %334 = vmatpush3.bf16.msra.mxu0 %v333_v19  ;;  %v367_v36 = vpack.c.bf16 %v70_v32, %v69_v31  ;;  %v23_v39 = vld [vmem:[%s621_s2 + $0x30] sm:$0xff]  ;;  %v339_v41 = vpack.c.bf16 %v40_v38, %v39_v37 }
   0xa   :  { %336 = vmatprep.subr.bf16.mxu0 %v335_v28  ;;  %v369_v40 = vpack.c.bf16 %v54_v34, %v53_v33  ;;  %v24_v42 = vld [vmem:[%s621_s2 + $0x38] sm:$0xff]  ;;  %v71_v43 = vld [vmem:[%s621_s2 + $0x1b0] sm:$0xff]  ;;  %v41_v48 = vld [vmem:[%s621_s2 + $0xc0] sm:$0xff] }
   0xb   :  { %366 = vmatpush3.bf16.msra.mxu1 %v365_v27  ;;  %v72_v44 = vld [vmem:[%s621_s2 + $0x1b8] sm:$0xff]  ;;  %v55_v46 = vld [vmem:[%s621_s2 + $0x130] sm:$0xff]  ;;  %v42_v50 = vld [vmem:[%s621_s2 + $0xc8] sm:$0xff]  ;;  %v341_v51 = vpack.c.bf16 %v24_v42, %v23_v39  ;;  %v102_v42 = vsub.s32 2, %v543_v63 }
   0xc   :  { %368 = vmatprep.subr.bf16.mxu1 %v367_v36  ;;  %v371_v45 = vpack.c.bf16 %v72_v44, %v71_v43  ;;  %v56_v47 = vld [vmem:[%s621_s2 + $0x138] sm:$0xff]  ;;  %v73_v52 = vld [vmem:[%s621_s2 + $0x1c0] sm:$0xff]  ;;  %v74_v53 = vld [vmem:[%s621_s2 + $0x1c8] sm:$0xff]  ;;  %v343_v55 = vpack.c.bf16 %v42_v50, %v41_v48 }
   0xd   :  { %338 = vmatpush3.bf16.msra.mxu0 %v337_v35  ;;  %v373_v54 = vpack.c.bf16 %v56_v47, %v55_v46  ;;  %v25_v56 = vld [vmem:[%s621_s2 + $0x40] sm:$0xff]  ;;  %v26_v57 = vld [vmem:[%s621_s2 + $0x48] sm:$0xff]  ;;  %v375_v59 = vpack.c.bf16 %v74_v53, %v73_v52  ;;  %v43_v61 = vld [vmem:[%s621_s2 + $0xd0] sm:$0xff] }
   0xe   :  { %340 = vmatprep.subr.bf16.mxu0 %v339_v41  ;;  %v57_v58 = vld [vmem:[%s621_s2 + $0x140] sm:$0xff]  ;;  %v58_v60 = vld [vmem:[%s621_s2 + $0x148] sm:$0xff]  ;;  %v44_v62 = vld [vmem:[%s621_s2 + $0xd8] sm:$0xff]  ;;  %v345_v2 = vpack.c.bf16 %v26_v57, %v25_v56 }
   0xf   :  { %370 = vmatpush3.bf16.msra.mxu1 %v369_v40  ;;  %v75_v0 = vld [vmem:[%s621_s2 + $0x1d0] sm:$0xff]  ;;  %v76_v1 = vld [vmem:[%s621_s2 + $0x1d8] sm:$0xff]  ;;  %v377_v3 = vpack.c.bf16 %v58_v60, %v57_v58  ;;  %v347_v4 = vpack.c.bf16 %v44_v62, %v43_v61  ;;  %v45_v10 = vld [vmem:[%s621_s2 + $0xe0] sm:$0xff]  ;;  %v89_v40 = vsub.s32 0, %v543_v63 }
  0x10   :  { %372 = vmatprep.subr.bf16.mxu1 %v371_v45  ;;  %v27_v5 = vld [vmem:[%s621_s2 + $0x50] sm:$0xff]  ;;  %v28_v6 = vld [vmem:[%s621_s2 + $0x58] sm:$0xff]  ;;  %v379_v8 = vpack.c.bf16 %v76_v1, %v75_v0  ;;  %v46_v11 = vld [vmem:[%s621_s2 + $0xe8] sm:$0xff] }
  0x11   :  { %342 = vmatpush3.bf16.msra.mxu0 %v341_v51  ;;  %v59_v7 = vld [vmem:[%s621_s2 + $0x150] sm:$0xff]  ;;  %v60_v9 = vld [vmem:[%s621_s2 + $0x158] sm:$0xff]  ;;  %v77_v14 = vld [vmem:[%s621_s2 + $0x1e0] sm:$0xff]  ;;  %v349_v16 = vpack.c.bf16 %v28_v6, %v27_v5  ;;  %v351_v20 = vpack.c.bf16 %v46_v11, %v45_v10 }
  0x12   :  { %344 = vmatprep.subr.bf16.mxu0 %v343_v55  ;;  %v78_v15 = vld [vmem:[%s621_s2 + $0x1e8] sm:$0xff]  ;;  %v29_v17 = vld [vmem:[%s621_s2 + $0x60] sm:$0xff]  ;;  %v381_v19 = vpack.c.bf16 %v60_v9, %v59_v7  ;;  %v47_v26 = vld [vmem:[%s621_s2 + $0xf0] sm:$0xff] }
  0x13   :  { %374 = vmatpush3.bf16.msra.mxu1 %v373_v54  ;;  %v30_v18 = vld [vmem:[%s621_s2 + $0x68] sm:$0xff]  ;;  %v61_v21 = vld [vmem:[%s621_s2 + $0x160] sm:$0xff]  ;;  %v383_v24 = vpack.c.bf16 %v78_v15, %v77_v14  ;;  %v48_v27 = vld [vmem:[%s621_s2 + $0xf8] sm:$0xff] }
  0x14   :  { %376 = vmatprep.subr.bf16.mxu1 %v375_v59  ;;  %v16_v22 = vld [vmem:[%s623_s0] sm:$0xf]  ;;  %v62_v25 = vld [vmem:[%s621_s2 + $0x168] sm:$0xff]  ;;  %v79_v30 = vld [vmem:[%s621_s2 + $0x1f0] sm:$0xff]  ;;  %v353_v32 = vpack.c.bf16 %v30_v18, %v29_v17  ;;  %v355_v34 = vpack.c.bf16 %v48_v27, %v47_v26 }
  0x15   :  { %346 = vmatpush3.bf16.msra.mxu0 %v345_v2  ;;  %v81_v23 = vld [vmem:[#allocation2] sm:$0x1]  ;;  %v99_v28 = vrot.slane %v16_v22, %v98_v12  ;;  %v107_v29 = vrot.slane %v16_v22, %v106_v13  ;;  %v80_v31 = vld [vmem:[%s621_s2 + $0x1f8] sm:$0xff]  ;;  %v385_v33 = vpack.c.bf16 %v62_v25, %v61_v21  ;;  %v31_v35 = vld [vmem:[%s621_s2 + $0x70] sm:$0xff]  ;;  %v95_v44 = vrot.slane %v16_v22, %v89_v40 }
  0x16   :  { %348 = vmatprep.subr.bf16.mxu0 %v347_v4  ;;  %84 = vperm.xlu0 %392, %v81_v23   ;;  %v32_v36 = vld [vmem:[%s621_s2 + $0x78] sm:$0xff]  ;;  %v387_v37 = vpack.c.bf16 %v80_v31, %v79_v30  ;;  %v63_v38 = vld [vmem:[%s621_s2 + $0x170] sm:$0xff]  ;;  %v103_v45 = vrot.slane %v16_v22, %v102_v42 }
  0x17   :  { %378 = vmatpush3.bf16.msra.mxu1 %v377_v3  ;;  %176 = vmatprep.mubr.f32.mxu0 %v99_v28  ;;  %v64_v39 = vld [vmem:[%s621_s2 + $0x178] sm:$0xff]  ;;  %v357_v41 = vpack.c.bf16 %v32_v36, %v31_v35 }
  0x18   :  { %380 = vmatprep.subr.bf16.mxu1 %v379_v8  ;;  %246 = vmatprep.mubr.f32.mxu1 %v107_v29  ;;  %v389_v43 = vpack.c.bf16 %v64_v39, %v63_v38 }
  0x19   :  { %350 = vmatpush3.bf16.msra.mxu0 %v349_v16 }
  0x1a   :  { %352 = vmatprep.subr.bf16.mxu0 %v351_v20 }
  0x1b   :  { %382 = vmatpush3.bf16.msra.mxu1 %v381_v19 }
  0x1c   :  { %384 = vmatprep.subr.bf16.mxu1 %v383_v24 }
  0x1d   :  { %354 = vmatpush3.bf16.msra.mxu0 %v353_v32 }
  0x1e   :  { %356 = vmatprep.subr.bf16.mxu0 %v355_v34 }
  0x1f   :  { %386 = vmatpush3.bf16.msra.mxu1 %v385_v33 }
  0x20   :  { %388 = vmatprep.subr.bf16.mxu1 %v387_v37 }
  0x21   :  { %358 = vmatpush3.bf16.msra.mxu0 %v357_v41 }
  0x23   :  { %390 = vmatpush3.bf16.msra.mxu1 %v389_v43 }
  0x24   :  { %177 = vmatmul.mubr.f32.vlgmr.msra.gmra.mrb[0].mxu0 %v95_v44 }
  0x26   :  { %247 = vmatmul.mubr.f32.vlgmr.msra.gmra.mrb[0].mxu1 %v103_v45 }
  0x95   :  { %v85_v46 = vpop.permute.xlu0 %84 }
  0x96   :  { %v90_v48 = vrot.slane %v85_v46, %v89_v40 }
  0xf7   :  { %v289_v47 = vpop.f32.mrb[0].mxu0 }
  0xf8   :  { %v290_v49 = vpop.f32.mrb[1].mxu0 }
  0xf9   :  { %v324_v50 = vpop.f32.mrb[0].mxu1  ;;  %v291_v51 = vadd.f32 %v290_v49, %v289_v47 }
  0xfa   :  { %v325_v52 = vpop.f32.mrb[1].mxu1 }
  0xfb   :  { %v326_v53 = vadd.f32 %v325_v52, %v324_v50  ;;  %v179_v54 = vadd.f32 %v291_v51, %v90_v48 }
  0xfd   :  { %v249_v55 = vadd.f32 %v326_v53, %v179_v54 }
  0xff   :  { %252 = vst [vmem:[%s624_s3] sm:$0x1] %v249_v55 }

</bundles_post_ra>
